<compile_context>
chip_gen: v7x
topology: tpu7x:2x2x1
jax: 0.10.0
libtpu: 0.0.40
codegen_flags: <defaults>
</compile_context>

<pallas_src>
import functools
import math

import jax
import jax.numpy as jnp
from jax import lax
from jax.experimental import pallas as pl
from jax.experimental.pallas import tpu as pltpu

NUM_HEADS = 8


# ----------------------------------------------------------------------------
# Fused kernel: per-head in_proj -> attention -> out_proj accumulation
# ----------------------------------------------------------------------------
def _fused_mha_kernel(x_ref, wq_ref, wk_ref, wv_ref, bq_ref, bk_ref, bv_ref,
                      wo_ref, bo_ref, o_ref, *, num_heads):
    S, E = x_ref.shape                      # leading batch dim is squeezed away
    D = E // num_heads

    x = x_ref[...].astype(jnp.bfloat16)     # (S, E) bf16 operand for the MXU

    # Start the (S, E) f32 accumulator from the out-projection bias.
    acc = jnp.broadcast_to(bo_ref[...], (S, E))

    for h in range(num_heads):              # statically unrolled, H = 8
        # Per-head projections straight out of the MXU (weights arrive
        # pre-split head-major from the wrapper).  The q scale 1/sqrt(D)
        # is already folded into wq/bq.
        q_h = lax.dot_general(x, wq_ref[h],
                              (((1,), (1,)), ((), ())),
                              preferred_element_type=jnp.float32) + bq_ref[h]
        k_h = lax.dot_general(x, wk_ref[h],
                              (((1,), (1,)), ((), ())),
                              preferred_element_type=jnp.float32) + bk_ref[h]
        v_h = lax.dot_general(x, wv_ref[h],
                              (((1,), (1,)), ((), ())),
                              preferred_element_type=jnp.float32) + bv_ref[h]

        # scores = q_h @ k_h^T : contract the head dim of both operands
        # (no in-kernel transpose), bf16 operands, f32 accumulation.
        s = lax.dot_general(q_h.astype(jnp.bfloat16), k_h.astype(jnp.bfloat16),
                            (((1,), (1,)), ((), ())),
                            preferred_element_type=jnp.float32)     # (S, S)

        # Numerically-stable softmax, all f32 (VPU/EUP).
        s = s - jnp.max(s, axis=-1, keepdims=True)
        p = jnp.exp(s)
        # Exact normalization: only an (S, 1) vector per head, so it costs
        # essentially nothing; keeps the only error source = bf16 rounding.
        p = p * pl.reciprocal(jnp.sum(p, axis=-1, keepdims=True), approx=False)

        ctx = jnp.dot(p.astype(jnp.bfloat16), v_h.astype(jnp.bfloat16),
                      preferred_element_type=jnp.float32)           # (S, D)

        # Per-head slice of the out-projection, accumulated in f32.
        acc = acc + jnp.dot(ctx.astype(jnp.bfloat16), wo_ref[h],
                            preferred_element_type=jnp.float32)     # (S, E)

    o_ref[...] = acc.astype(o_ref.dtype)


# ----------------------------------------------------------------------------
# AttentionLayer forward
# ----------------------------------------------------------------------------
def attention_layer_forward(x, params, num_heads=NUM_HEADS):
    """Equivalent to: attn_out, _ = nn.MultiheadAttention(E, 8)(x, x, x)."""
    S, B, E = x.shape
    D = E // num_heads
    scale = 1.0 / math.sqrt(D)

    w_in = params["in_proj_weight"]          # (3E, E)
    b_in = params["in_proj_bias"]            # (3E,)
    w_out = params["out_proj_weight"]        # (E, E)
    b_out = params["out_proj_bias"]          # (E,)

    # One-time wrapper-side re-layouts (outside the kernel):
    #  * q/k/v weights split head-major (H, D, E); 1/sqrt(D) folded into q
    #  * out_proj weight per head: wo[h] = W_out[:, h*D:(h+1)*D].T  -> (H, D, E)
    #  * weights cast to bf16 (f32 accumulation happens inside the kernel)
    wq = (w_in[:E].reshape(num_heads, D, E) * scale).astype(jnp.bfloat16)
    wk = w_in[E:2 * E].reshape(num_heads, D, E).astype(jnp.bfloat16)
    wv = w_in[2 * E:].reshape(num_heads, D, E).astype(jnp.bfloat16)
    bq = (b_in[:E].reshape(num_heads, 1, D) * scale).astype(jnp.float32)
    bk = b_in[E:2 * E].reshape(num_heads, 1, D).astype(jnp.float32)
    bv = b_in[2 * E:].reshape(num_heads, 1, D).astype(jnp.float32)
    wo = w_out.reshape(E, num_heads, D).transpose(1, 2, 0).astype(jnp.bfloat16)
    bo = b_out.reshape(1, E).astype(jnp.float32)

    # Batch-major view so every block's last two dims equal the full (S, E)
    # extents (satisfies the (8,128) layout rule at any size).
    xb = jnp.transpose(x, (1, 0, 2))         # (B, S, E)

    kernel = functools.partial(_fused_mha_kernel, num_heads=num_heads)

    w_spec = pl.BlockSpec((num_heads, D, E), lambda b: (0, 0, 0))
    b_spec = pl.BlockSpec((num_heads, 1, D), lambda b: (0, 0, 0))

    # Advisory cost estimate so XLA can overlap surrounding ops with the call.
    flops = B * (8 * S * E * E + 4 * S * S * E)
    bytes_accessed = (2 * B * S * E * 4        # x in + out (f32)
                      + 4 * E * E * 2          # bf16 weights
                      + 4 * E * 4)             # biases (f32)
    cost = pl.CostEstimate(flops=flops,
                           transcendentals=B * num_heads * S * S,
                           bytes_accessed=bytes_accessed)

    out = pl.pallas_call(
        kernel,
        out_shape=jax.ShapeDtypeStruct((B, S, E), x.dtype),
        grid=(B,),
        in_specs=[
            pl.BlockSpec((None, S, E), lambda b: (b, 0, 0)),       # x[b]
            w_spec, w_spec, w_spec,                                # wq, wk, wv
            b_spec, b_spec, b_spec,                                # bq, bk, bv
            pl.BlockSpec((num_heads, D, E), lambda b: (0, 0, 0)),  # wo (per-head)
            pl.BlockSpec((1, E), lambda b: (0, 0)),                # out_proj bias
        ],
        out_specs=pl.BlockSpec((None, S, E), lambda b: (b, 0, 0)),
        compiler_params=pltpu.CompilerParams(
            dimension_semantics=("parallel",)),
        cost_estimate=cost,
    )(xb, wq, wk, wv, bq, bk, bv, wo, bo)

    return jnp.transpose(out, (1, 0, 2))      # back to (S, B, E)


def init_params(key, hidden_dim):
    k1, k2, k3, k4 = jax.random.split(key, 4)
    bound_in = math.sqrt(6.0 / (hidden_dim + 3 * hidden_dim))
    bound_out = math.sqrt(6.0 / (2 * hidden_dim))
    return {
        "in_proj_weight": jax.random.uniform(
            k1, (3 * hidden_dim, hidden_dim), jnp.float32, -bound_in, bound_in),
        "in_proj_bias": 0.05 * jax.random.normal(k3, (3 * hidden_dim,), jnp.float32),
        "out_proj_weight": jax.random.uniform(
            k2, (hidden_dim, hidden_dim), jnp.float32, -bound_out, bound_out),
        "out_proj_bias": 0.05 * jax.random.normal(k4, (hidden_dim,), jnp.float32),
    }


# ----------------------------------------------------------------------------
# Pure-JAX reference (correctness check only)
# ----------------------------------------------------------------------------
def reference_forward(x, params, num_heads=NUM_HEADS):
    S, B, E = x.shape
    D = E // num_heads
    qkv = x.reshape(S * B, E) @ params["in_proj_weight"].T + params["in_proj_bias"]
    q, k, v = jnp.split(qkv, 3, axis=-1)
    q = q.reshape(S, B * num_heads, D).transpose(1, 0, 2)
    k = k.reshape(S, B * num_heads, D).transpose(1, 0, 2)
    v = v.reshape(S, B * num_heads, D).transpose(1, 0, 2)
    s = jnp.einsum("bqd,bkd->bqk", q, k) / math.sqrt(D)
    p = jax.nn.softmax(s, axis=-1)
    o = jnp.einsum("bqk,bkd->bqd", p, v)
    o = o.transpose(1, 0, 2).reshape(S * B, E)
    o = o @ params["out_proj_weight"].T + params["out_proj_bias"]
    return o.reshape(S, B, E)


if __name__ == "__main__":
    seq_len, batch, hidden_dim = 8, 2, 32   # hidden_dim divisible by num_heads=8

    key = jax.random.PRNGKey(0)
    kx, kp = jax.random.split(key)
    x = jax.random.normal(kx, (seq_len, batch, hidden_dim), jnp.float32)
    params = init_params(kp, hidden_dim)

    out = attention_layer_forward(x, params)
    out = jax.block_until_ready(out)

    ref = reference_forward(x, params)
    assert out.shape == (seq_len, batch, hidden_dim)
    # Tolerance reflects bf16 MXU operands (f32 accumulation) vs the all-f32
    # reference; softmax math and accumulation remain f32 in the kernel.
    assert jnp.allclose(out, ref, atol=3e-2, rtol=3e-2)

    print("KERNEL_OK")
</pallas_src>

<mosaic_0001>
module attributes {stable_mosaic.version = 11 : i64} {
  func.func @_fused_mha_kernel(%arg0: i32, %arg1: memref<1x8x32xf32, #tpu.memory_space<vmem>>, %arg2: memref<8x4x32xbf16, #tpu.memory_space<vmem>>, %arg3: memref<8x4x32xbf16, #tpu.memory_space<vmem>>, %arg4: memref<8x4x32xbf16, #tpu.memory_space<vmem>>, %arg5: memref<8x1x4xf32, #tpu.memory_space<vmem>>, %arg6: memref<8x1x4xf32, #tpu.memory_space<vmem>>, %arg7: memref<8x1x4xf32, #tpu.memory_space<vmem>>, %arg8: memref<8x4x32xbf16, #tpu.memory_space<vmem>>, %arg9: memref<1x32xf32, #tpu.memory_space<vmem>>, %arg10: memref<1x8x32xf32, #tpu.memory_space<vmem>>) attributes {dimension_semantics = [#tpu.dimension_semantics<parallel>], iteration_bounds = array<i64: 2>, scalar_prefetch = 0 : i64, scratch_operands = 0 : i64, tpu.core_type = #tpu.core_type<tc>, window_params = [{transform_indices = @transform_0, window_bounds = array<i64: 1, 8, 32>}, {pipeline_mode = #tpu.pipeline_mode<synchronous>, transform_indices = @transform_1, window_bounds = array<i64: 8, 4, 32>}, {pipeline_mode = #tpu.pipeline_mode<synchronous>, transform_indices = @transform_2, window_bounds = array<i64: 8, 4, 32>}, {pipeline_mode = #tpu.pipeline_mode<synchronous>, transform_indices = @transform_3, window_bounds = array<i64: 8, 4, 32>}, {pipeline_mode = #tpu.pipeline_mode<synchronous>, transform_indices = @transform_4, window_bounds = array<i64: 8, 1, 4>}, {pipeline_mode = #tpu.pipeline_mode<synchronous>, transform_indices = @transform_5, window_bounds = array<i64: 8, 1, 4>}, {pipeline_mode = #tpu.pipeline_mode<synchronous>, transform_indices = @transform_6, window_bounds = array<i64: 8, 1, 4>}, {pipeline_mode = #tpu.pipeline_mode<synchronous>, transform_indices = @transform_7, window_bounds = array<i64: 8, 4, 32>}, {pipeline_mode = #tpu.pipeline_mode<synchronous>, transform_indices = @transform_8, window_bounds = array<i64: 1, 32>}, {transform_indices = @transform_9, window_bounds = array<i64: 1, 8, 32>}]} {
    %c0 = arith.constant 0 : index
    %c0_0 = arith.constant 0 : index
    %c0_1 = arith.constant 0 : index
    %0 = vector.load %arg1[%c0, %c0_0, %c0_1] : memref<1x8x32xf32, #tpu.memory_space<vmem>>, vector<1x8x32xf32>
    %1 = vector.shape_cast %0 : vector<1x8x32xf32> to vector<8x32xf32>
    %2 = arith.truncf %1 : vector<8x32xf32> to vector<8x32xbf16>
    %c0_2 = arith.constant 0 : index
    %c0_3 = arith.constant 0 : index
    %3 = vector.load %arg9[%c0_2, %c0_3] : memref<1x32xf32, #tpu.memory_space<vmem>>, vector<1x32xf32>
    %4 = vector.shape_cast %3 : vector<1x32xf32> to vector<1x32xf32>
    %5 = vector.broadcast %4 : vector<1x32xf32> to vector<8x32xf32>
    %c0_4 = arith.constant 0 : index
    %c0_5 = arith.constant 0 : index
    %c0_6 = arith.constant 0 : index
    %6 = vector.load %arg2[%c0_4, %c0_5, %c0_6] : memref<8x4x32xbf16, #tpu.memory_space<vmem>>, vector<1x4x32xbf16>
    %7 = vector.shape_cast %6 : vector<1x4x32xbf16> to vector<4x32xbf16>
    %cst = arith.constant dense<0.000000e+00> : vector<8x4xf32>
    %8 = tpu.matmul %2, %7, %cst {dimension_numbers = #tpu.dot_dimension_numbers<[1], [1], [0], [0], [0, 0, 1, 0], [], []>} : vector<8x32xbf16>, vector<4x32xbf16>, vector<8x4xf32> -> vector<8x4xf32>
    %c0_7 = arith.constant 0 : index
    %c0_8 = arith.constant 0 : index
    %c0_9 = arith.constant 0 : index
    %9 = vector.load %arg5[%c0_7, %c0_8, %c0_9] : memref<8x1x4xf32, #tpu.memory_space<vmem>>, vector<1x1x4xf32>
    %10 = vector.shape_cast %9 : vector<1x1x4xf32> to vector<1x4xf32>
    %11 = vector.broadcast %10 : vector<1x4xf32> to vector<8x4xf32>
    %12 = arith.addf %8, %11 : vector<8x4xf32>
    %c0_10 = arith.constant 0 : index
    %c0_11 = arith.constant 0 : index
    %c0_12 = arith.constant 0 : index
    %13 = vector.load %arg3[%c0_10, %c0_11, %c0_12] : memref<8x4x32xbf16, #tpu.memory_space<vmem>>, vector<1x4x32xbf16>
    %14 = vector.shape_cast %13 : vector<1x4x32xbf16> to vector<4x32xbf16>
    %cst_13 = arith.constant dense<0.000000e+00> : vector<8x4xf32>
    %15 = tpu.matmul %2, %14, %cst_13 {dimension_numbers = #tpu.dot_dimension_numbers<[1], [1], [0], [0], [0, 0, 1, 0], [], []>} : vector<8x32xbf16>, vector<4x32xbf16>, vector<8x4xf32> -> vector<8x4xf32>
    %c0_14 = arith.constant 0 : index
    %c0_15 = arith.constant 0 : index
    %c0_16 = arith.constant 0 : index
    %16 = vector.load %arg6[%c0_14, %c0_15, %c0_16] : memref<8x1x4xf32, #tpu.memory_space<vmem>>, vector<1x1x4xf32>
    %17 = vector.shape_cast %16 : vector<1x1x4xf32> to vector<1x4xf32>
    %18 = vector.broadcast %17 : vector<1x4xf32> to vector<8x4xf32>
    %19 = arith.addf %15, %18 : vector<8x4xf32>
    %c0_17 = arith.constant 0 : index
    %c0_18 = arith.constant 0 : index
    %c0_19 = arith.constant 0 : index
    %20 = vector.load %arg4[%c0_17, %c0_18, %c0_19] : memref<8x4x32xbf16, #tpu.memory_space<vmem>>, vector<1x4x32xbf16>
    %21 = vector.shape_cast %20 : vector<1x4x32xbf16> to vector<4x32xbf16>
    %cst_20 = arith.constant dense<0.000000e+00> : vector<8x4xf32>
    %22 = tpu.matmul %2, %21, %cst_20 {dimension_numbers = #tpu.dot_dimension_numbers<[1], [1], [0], [0], [0, 0, 1, 0], [], []>} : vector<8x32xbf16>, vector<4x32xbf16>, vector<8x4xf32> -> vector<8x4xf32>
    %c0_21 = arith.constant 0 : index
    %c0_22 = arith.constant 0 : index
    %c0_23 = arith.constant 0 : index
    %23 = vector.load %arg7[%c0_21, %c0_22, %c0_23] : memref<8x1x4xf32, #tpu.memory_space<vmem>>, vector<1x1x4xf32>
    %24 = vector.shape_cast %23 : vector<1x1x4xf32> to vector<1x4xf32>
    %25 = vector.broadcast %24 : vector<1x4xf32> to vector<8x4xf32>
    %26 = arith.addf %22, %25 : vector<8x4xf32>
    %27 = arith.truncf %12 : vector<8x4xf32> to vector<8x4xbf16>
    %28 = arith.truncf %19 : vector<8x4xf32> to vector<8x4xbf16>
    %cst_24 = arith.constant dense<0.000000e+00> : vector<8x8xf32>
    %29 = tpu.matmul %27, %28, %cst_24 {dimension_numbers = #tpu.dot_dimension_numbers<[1], [1], [0], [0], [0, 0, 1, 0], [], []>} : vector<8x4xbf16>, vector<8x4xbf16>, vector<8x8xf32> -> vector<8x8xf32>
    %cst_25 = arith.constant dense<0xFF800000> : vector<8xf32>
    %30 = vector.multi_reduction <maximumf>, %29, %cst_25 [1] : vector<8x8xf32> to vector<8xf32>
    %31 = vector.shape_cast %30 : vector<8xf32> to vector<8x1xf32>
    %32 = vector.broadcast %31 : vector<8x1xf32> to vector<8x8xf32>
    %33 = arith.subf %29, %32 : vector<8x8xf32>
    %34 = math.exp %33 : vector<8x8xf32>
    %cst_26 = arith.constant dense<0.000000e+00> : vector<8xf32>
    %35 = vector.multi_reduction <add>, %34, %cst_26 [1] : vector<8x8xf32> to vector<8xf32>
    %36 = vector.shape_cast %35 : vector<8xf32> to vector<8x1xf32>
    %37 = tpu.reciprocal %36 : vector<8x1xf32> -> vector<8x1xf32>
    %38 = vector.broadcast %37 : vector<8x1xf32> to vector<8x8xf32>
    %39 = arith.mulf %34, %38 : vector<8x8xf32>
    %40 = arith.truncf %39 : vector<8x8xf32> to vector<8x8xbf16>
    %41 = arith.truncf %26 : vector<8x4xf32> to vector<8x4xbf16>
    %cst_27 = arith.constant dense<0.000000e+00> : vector<8x4xf32>
    %42 = tpu.matmul %40, %41, %cst_27 {dimension_numbers = #tpu.dot_dimension_numbers<[1], [0], [0], [1], [0, 0, 1, 1], [], []>} : vector<8x8xbf16>, vector<8x4xbf16>, vector<8x4xf32> -> vector<8x4xf32>
    %43 = arith.truncf %42 : vector<8x4xf32> to vector<8x4xbf16>
    %c0_28 = arith.constant 0 : index
    %c0_29 = arith.constant 0 : index
    %c0_30 = arith.constant 0 : index
    %44 = vector.load %arg8[%c0_28, %c0_29, %c0_30] : memref<8x4x32xbf16, #tpu.memory_space<vmem>>, vector<1x4x32xbf16>
    %45 = vector.shape_cast %44 : vector<1x4x32xbf16> to vector<4x32xbf16>
    %cst_31 = arith.constant dense<0.000000e+00> : vector<8x32xf32>
    %46 = tpu.matmul %43, %45, %cst_31 {dimension_numbers = #tpu.dot_dimension_numbers<[1], [0], [0], [1], [0, 0, 1, 1], [], []>} : vector<8x4xbf16>, vector<4x32xbf16>, vector<8x32xf32> -> vector<8x32xf32>
    %47 = arith.addf %5, %46 : vector<8x32xf32>
    %c1 = arith.constant 1 : index
    %c0_32 = arith.constant 0 : index
    %c0_33 = arith.constant 0 : index
    %48 = vector.load %arg2[%c1, %c0_32, %c0_33] : memref<8x4x32xbf16, #tpu.memory_space<vmem>>, vector<1x4x32xbf16>
    %49 = vector.shape_cast %48 : vector<1x4x32xbf16> to vector<4x32xbf16>
    %cst_34 = arith.constant dense<0.000000e+00> : vector<8x4xf32>
    %50 = tpu.matmul %2, %49, %cst_34 {dimension_numbers = #tpu.dot_dimension_numbers<[1], [1], [0], [0], [0, 0, 1, 0], [], []>} : vector<8x32xbf16>, vector<4x32xbf16>, vector<8x4xf32> -> vector<8x4xf32>
    %c1_35 = arith.constant 1 : index
    %c0_36 = arith.constant 0 : index
    %c0_37 = arith.constant 0 : index
    %51 = vector.load %arg5[%c1_35, %c0_36, %c0_37] : memref<8x1x4xf32, #tpu.memory_space<vmem>>, vector<1x1x4xf32>
    %52 = vector.shape_cast %51 : vector<1x1x4xf32> to vector<1x4xf32>
    %53 = vector.broadcast %52 : vector<1x4xf32> to vector<8x4xf32>
    %54 = arith.addf %50, %53 : vector<8x4xf32>
    %c1_38 = arith.constant 1 : index
    %c0_39 = arith.constant 0 : index
    %c0_40 = arith.constant 0 : index
    %55 = vector.load %arg3[%c1_38, %c0_39, %c0_40] : memref<8x4x32xbf16, #tpu.memory_space<vmem>>, vector<1x4x32xbf16>
    %56 = vector.shape_cast %55 : vector<1x4x32xbf16> to vector<4x32xbf16>
    %cst_41 = arith.constant dense<0.000000e+00> : vector<8x4xf32>
    %57 = tpu.matmul %2, %56, %cst_41 {dimension_numbers = #tpu.dot_dimension_numbers<[1], [1], [0], [0], [0, 0, 1, 0], [], []>} : vector<8x32xbf16>, vector<4x32xbf16>, vector<8x4xf32> -> vector<8x4xf32>
    %c1_42 = arith.constant 1 : index
    %c0_43 = arith.constant 0 : index
    %c0_44 = arith.constant 0 : index
    %58 = vector.load %arg6[%c1_42, %c0_43, %c0_44] : memref<8x1x4xf32, #tpu.memory_space<vmem>>, vector<1x1x4xf32>
    %59 = vector.shape_cast %58 : vector<1x1x4xf32> to vector<1x4xf32>
    %60 = vector.broadcast %59 : vector<1x4xf32> to vector<8x4xf32>
    %61 = arith.addf %57, %60 : vector<8x4xf32>
    %c1_45 = arith.constant 1 : index
    %c0_46 = arith.constant 0 : index
    %c0_47 = arith.constant 0 : index
    %62 = vector.load %arg4[%c1_45, %c0_46, %c0_47] : memref<8x4x32xbf16, #tpu.memory_space<vmem>>, vector<1x4x32xbf16>
    %63 = vector.shape_cast %62 : vector<1x4x32xbf16> to vector<4x32xbf16>
    %cst_48 = arith.constant dense<0.000000e+00> : vector<8x4xf32>
    %64 = tpu.matmul %2, %63, %cst_48 {dimension_numbers = #tpu.dot_dimension_numbers<[1], [1], [0], [0], [0, 0, 1, 0], [], []>} : vector<8x32xbf16>, vector<4x32xbf16>, vector<8x4xf32> -> vector<8x4xf32>
    %c1_49 = arith.constant 1 : index
    %c0_50 = arith.constant 0 : index
    %c0_51 = arith.constant 0 : index
    %65 = vector.load %arg7[%c1_49, %c0_50, %c0_51] : memref<8x1x4xf32, #tpu.memory_space<vmem>>, vector<1x1x4xf32>
    %66 = vector.shape_cast %65 : vector<1x1x4xf32> to vector<1x4xf32>
    %67 = vector.broadcast %66 : vector<1x4xf32> to vector<8x4xf32>
    %68 = arith.addf %64, %67 : vector<8x4xf32>
    %69 = arith.truncf %54 : vector<8x4xf32> to vector<8x4xbf16>
    %70 = arith.truncf %61 : vector<8x4xf32> to vector<8x4xbf16>
    %cst_52 = arith.constant dense<0.000000e+00> : vector<8x8xf32>
    %71 = tpu.matmul %69, %70, %cst_52 {dimension_numbers = #tpu.dot_dimension_numbers<[1], [1], [0], [0], [0, 0, 1, 0], [], []>} : vector<8x4xbf16>, vector<8x4xbf16>, vector<8x8xf32> -> vector<8x8xf32>
    %cst_53 = arith.constant dense<0xFF800000> : vector<8xf32>
    %72 = vector.multi_reduction <maximumf>, %71, %cst_53 [1] : vector<8x8xf32> to vector<8xf32>
    %73 = vector.shape_cast %72 : vector<8xf32> to vector<8x1xf32>
    %74 = vector.broadcast %73 : vector<8x1xf32> to vector<8x8xf32>
    %75 = arith.subf %71, %74 : vector<8x8xf32>
    %76 = math.exp %75 : vector<8x8xf32>
    %cst_54 = arith.constant dense<0.000000e+00> : vector<8xf32>
    %77 = vector.multi_reduction <add>, %76, %cst_54 [1] : vector<8x8xf32> to vector<8xf32>
    %78 = vector.shape_cast %77 : vector<8xf32> to vector<8x1xf32>
    %79 = tpu.reciprocal %78 : vector<8x1xf32> -> vector<8x1xf32>
    %80 = vector.broadcast %79 : vector<8x1xf32> to vector<8x8xf32>
    %81 = arith.mulf %76, %80 : vector<8x8xf32>
    %82 = arith.truncf %81 : vector<8x8xf32> to vector<8x8xbf16>
    %83 = arith.truncf %68 : vector<8x4xf32> to vector<8x4xbf16>
    %cst_55 = arith.constant dense<0.000000e+00> : vector<8x4xf32>
    %84 = tpu.matmul %82, %83, %cst_55 {dimension_numbers = #tpu.dot_dimension_numbers<[1], [0], [0], [1], [0, 0, 1, 1], [], []>} : vector<8x8xbf16>, vector<8x4xbf16>, vector<8x4xf32> -> vector<8x4xf32>
    %85 = arith.truncf %84 : vector<8x4xf32> to vector<8x4xbf16>
    %c1_56 = arith.constant 1 : index
    %c0_57 = arith.constant 0 : index
    %c0_58 = arith.constant 0 : index
    %86 = vector.load %arg8[%c1_56, %c0_57, %c0_58] : memref<8x4x32xbf16, #tpu.memory_space<vmem>>, vector<1x4x32xbf16>
    %87 = vector.shape_cast %86 : vector<1x4x32xbf16> to vector<4x32xbf16>
    %cst_59 = arith.constant dense<0.000000e+00> : vector<8x32xf32>
    %88 = tpu.matmul %85, %87, %cst_59 {dimension_numbers = #tpu.dot_dimension_numbers<[1], [0], [0], [1], [0, 0, 1, 1], [], []>} : vector<8x4xbf16>, vector<4x32xbf16>, vector<8x32xf32> -> vector<8x32xf32>
    %89 = arith.addf %47, %88 : vector<8x32xf32>
    %c2 = arith.constant 2 : index
    %c0_60 = arith.constant 0 : index
    %c0_61 = arith.constant 0 : index
    %90 = vector.load %arg2[%c2, %c0_60, %c0_61] : memref<8x4x32xbf16, #tpu.memory_space<vmem>>, vector<1x4x32xbf16>
    %91 = vector.shape_cast %90 : vector<1x4x32xbf16> to vector<4x32xbf16>
    %cst_62 = arith.constant dense<0.000000e+00> : vector<8x4xf32>
    %92 = tpu.matmul %2, %91, %cst_62 {dimension_numbers = #tpu.dot_dimension_numbers<[1], [1], [0], [0], [0, 0, 1, 0], [], []>} : vector<8x32xbf16>, vector<4x32xbf16>, vector<8x4xf32> -> vector<8x4xf32>
    %c2_63 = arith.constant 2 : index
    %c0_64 = arith.constant 0 : index
    %c0_65 = arith.constant 0 : index
    %93 = vector.load %arg5[%c2_63, %c0_64, %c0_65] : memref<8x1x4xf32, #tpu.memory_space<vmem>>, vector<1x1x4xf32>
    %94 = vector.shape_cast %93 : vector<1x1x4xf32> to vector<1x4xf32>
    %95 = vector.broadcast %94 : vector<1x4xf32> to vector<8x4xf32>
    %96 = arith.addf %92, %95 : vector<8x4xf32>
    %c2_66 = arith.constant 2 : index
    %c0_67 = arith.constant 0 : index
    %c0_68 = arith.constant 0 : index
    %97 = vector.load %arg3[%c2_66, %c0_67, %c0_68] : memref<8x4x32xbf16, #tpu.memory_space<vmem>>, vector<1x4x32xbf16>
    %98 = vector.shape_cast %97 : vector<1x4x32xbf16> to vector<4x32xbf16>
    %cst_69 = arith.constant dense<0.000000e+00> : vector<8x4xf32>
    %99 = tpu.matmul %2, %98, %cst_69 {dimension_numbers = #tpu.dot_dimension_numbers<[1], [1], [0], [0], [0, 0, 1, 0], [], []>} : vector<8x32xbf16>, vector<4x32xbf16>, vector<8x4xf32> -> vector<8x4xf32>
    %c2_70 = arith.constant 2 : index
    %c0_71 = arith.constant 0 : index
    %c0_72 = arith.constant 0 : index
    %100 = vector.load %arg6[%c2_70, %c0_71, %c0_72] : memref<8x1x4xf32, #tpu.memory_space<vmem>>, vector<1x1x4xf32>
    %101 = vector.shape_cast %100 : vector<1x1x4xf32> to vector<1x4xf32>
    %102 = vector.broadcast %101 : vector<1x4xf32> to vector<8x4xf32>
    %103 = arith.addf %99, %102 : vector<8x4xf32>
    %c2_73 = arith.constant 2 : index
    %c0_74 = arith.constant 0 : index
    %c0_75 = arith.constant 0 : index
    %104 = vector.load %arg4[%c2_73, %c0_74, %c0_75] : memref<8x4x32xbf16, #tpu.memory_space<vmem>>, vector<1x4x32xbf16>
    %105 = vector.shape_cast %104 : vector<1x4x32xbf16> to vector<4x32xbf16>
    %cst_76 = arith.constant dense<0.000000e+00> : vector<8x4xf32>
    %106 = tpu.matmul %2, %105, %cst_76 {dimension_numbers = #tpu.dot_dimension_numbers<[1], [1], [0], [0], [0, 0, 1, 0], [], []>} : vector<8x32xbf16>, vector<4x32xbf16>, vector<8x4xf32> -> vector<8x4xf32>
    %c2_77 = arith.constant 2 : index
    %c0_78 = arith.constant 0 : index
    %c0_79 = arith.constant 0 : index
    %107 = vector.load %arg7[%c2_77, %c0_78, %c0_79] : memref<8x1x4xf32, #tpu.memory_space<vmem>>, vector<1x1x4xf32>
    %108 = vector.shape_cast %107 : vector<1x1x4xf32> to vector<1x4xf32>
    %109 = vector.broadcast %108 : vector<1x4xf32> to vector<8x4xf32>
    %110 = arith.addf %106, %109 : vector<8x4xf32>
    %111 = arith.truncf %96 : vector<8x4xf32> to vector<8x4xbf16>
    %112 = arith.truncf %103 : vector<8x4xf32> to vector<8x4xbf16>
    %cst_80 = arith.constant dense<0.000000e+00> : vector<8x8xf32>
    %113 = tpu.matmul %111, %112, %cst_80 {dimension_numbers = #tpu.dot_dimension_numbers<[1], [1], [0], [0], [0, 0, 1, 0], [], []>} : vector<8x4xbf16>, vector<8x4xbf16>, vector<8x8xf32> -> vector<8x8xf32>
    %cst_81 = arith.constant dense<0xFF800000> : vector<8xf32>
    %114 = vector.multi_reduction <maximumf>, %113, %cst_81 [1] : vector<8x8xf32> to vector<8xf32>
    %115 = vector.shape_cast %114 : vector<8xf32> to vector<8x1xf32>
    %116 = vector.broadcast %115 : vector<8x1xf32> to vector<8x8xf32>
    %117 = arith.subf %113, %116 : vector<8x8xf32>
    %118 = math.exp %117 : vector<8x8xf32>
    %cst_82 = arith.constant dense<0.000000e+00> : vector<8xf32>
    %119 = vector.multi_reduction <add>, %118, %cst_82 [1] : vector<8x8xf32> to vector<8xf32>
    %120 = vector.shape_cast %119 : vector<8xf32> to vector<8x1xf32>
    %121 = tpu.reciprocal %120 : vector<8x1xf32> -> vector<8x1xf32>
    %122 = vector.broadcast %121 : vector<8x1xf32> to vector<8x8xf32>
    %123 = arith.mulf %118, %122 : vector<8x8xf32>
    %124 = arith.truncf %123 : vector<8x8xf32> to vector<8x8xbf16>
    %125 = arith.truncf %110 : vector<8x4xf32> to vector<8x4xbf16>
    %cst_83 = arith.constant dense<0.000000e+00> : vector<8x4xf32>
    %126 = tpu.matmul %124, %125, %cst_83 {dimension_numbers = #tpu.dot_dimension_numbers<[1], [0], [0], [1], [0, 0, 1, 1], [], []>} : vector<8x8xbf16>, vector<8x4xbf16>, vector<8x4xf32> -> vector<8x4xf32>
    %127 = arith.truncf %126 : vector<8x4xf32> to vector<8x4xbf16>
    %c2_84 = arith.constant 2 : index
    %c0_85 = arith.constant 0 : index
    %c0_86 = arith.constant 0 : index
    %128 = vector.load %arg8[%c2_84, %c0_85, %c0_86] : memref<8x4x32xbf16, #tpu.memory_space<vmem>>, vector<1x4x32xbf16>
    %129 = vector.shape_cast %128 : vector<1x4x32xbf16> to vector<4x32xbf16>
    %cst_87 = arith.constant dense<0.000000e+00> : vector<8x32xf32>
    %130 = tpu.matmul %127, %129, %cst_87 {dimension_numbers = #tpu.dot_dimension_numbers<[1], [0], [0], [1], [0, 0, 1, 1], [], []>} : vector<8x4xbf16>, vector<4x32xbf16>, vector<8x32xf32> -> vector<8x32xf32>
    %131 = arith.addf %89, %130 : vector<8x32xf32>
    %c3 = arith.constant 3 : index
    %c0_88 = arith.constant 0 : index
    %c0_89 = arith.constant 0 : index
    %132 = vector.load %arg2[%c3, %c0_88, %c0_89] : memref<8x4x32xbf16, #tpu.memory_space<vmem>>, vector<1x4x32xbf16>
    %133 = vector.shape_cast %132 : vector<1x4x32xbf16> to vector<4x32xbf16>
    %cst_90 = arith.constant dense<0.000000e+00> : vector<8x4xf32>
    %134 = tpu.matmul %2, %133, %cst_90 {dimension_numbers = #tpu.dot_dimension_numbers<[1], [1], [0], [0], [0, 0, 1, 0], [], []>} : vector<8x32xbf16>, vector<4x32xbf16>, vector<8x4xf32> -> vector<8x4xf32>
    %c3_91 = arith.constant 3 : index
    %c0_92 = arith.constant 0 : index
    %c0_93 = arith.constant 0 : index
    %135 = vector.load %arg5[%c3_91, %c0_92, %c0_93] : memref<8x1x4xf32, #tpu.memory_space<vmem>>, vector<1x1x4xf32>
    %136 = vector.shape_cast %135 : vector<1x1x4xf32> to vector<1x4xf32>
    %137 = vector.broadcast %136 : vector<1x4xf32> to vector<8x4xf32>
    %138 = arith.addf %134, %137 : vector<8x4xf32>
    %c3_94 = arith.constant 3 : index
    %c0_95 = arith.constant 0 : index
    %c0_96 = arith.constant 0 : index
    %139 = vector.load %arg3[%c3_94, %c0_95, %c0_96] : memref<8x4x32xbf16, #tpu.memory_space<vmem>>, vector<1x4x32xbf16>
    %140 = vector.shape_cast %139 : vector<1x4x32xbf16> to vector<4x32xbf16>
    %cst_97 = arith.constant dense<0.000000e+00> : vector<8x4xf32>
    %141 = tpu.matmul %2, %140, %cst_97 {dimension_numbers = #tpu.dot_dimension_numbers<[1], [1], [0], [0], [0, 0, 1, 0], [], []>} : vector<8x32xbf16>, vector<4x32xbf16>, vector<8x4xf32> -> vector<8x4xf32>
    %c3_98 = arith.constant 3 : index
    %c0_99 = arith.constant 0 : index
    %c0_100 = arith.constant 0 : index
    %142 = vector.load %arg6[%c3_98, %c0_99, %c0_100] : memref<8x1x4xf32, #tpu.memory_space<vmem>>, vector<1x1x4xf32>
    %143 = vector.shape_cast %142 : vector<1x1x4xf32> to vector<1x4xf32>
    %144 = vector.broadcast %143 : vector<1x4xf32> to vector<8x4xf32>
    %145 = arith.addf %141, %144 : vector<8x4xf32>
    %c3_101 = arith.constant 3 : index
    %c0_102 = arith.constant 0 : index
    %c0_103 = arith.constant 0 : index
    %146 = vector.load %arg4[%c3_101, %c0_102, %c0_103] : memref<8x4x32xbf16, #tpu.memory_space<vmem>>, vector<1x4x32xbf16>
    %147 = vector.shape_cast %146 : vector<1x4x32xbf16> to vector<4x32xbf16>
    %cst_104 = arith.constant dense<0.000000e+00> : vector<8x4xf32>
    %148 = tpu.matmul %2, %147, %cst_104 {dimension_numbers = #tpu.dot_dimension_numbers<[1], [1], [0], [0], [0, 0, 1, 0], [], []>} : vector<8x32xbf16>, vector<4x32xbf16>, vector<8x4xf32> -> vector<8x4xf32>
    %c3_105 = arith.constant 3 : index
    %c0_106 = arith.constant 0 : index
    %c0_107 = arith.constant 0 : index
    %149 = vector.load %arg7[%c3_105, %c0_106, %c0_107] : memref<8x1x4xf32, #tpu.memory_space<vmem>>, vector<1x1x4xf32>
    %150 = vector.shape_cast %149 : vector<1x1x4xf32> to vector<1x4xf32>
    %151 = vector.broadcast %150 : vector<1x4xf32> to vector<8x4xf32>
    %152 = arith.addf %148, %151 : vector<8x4xf32>
    %153 = arith.truncf %138 : vector<8x4xf32> to vector<8x4xbf16>
    %154 = arith.truncf %145 : vector<8x4xf32> to vector<8x4xbf16>
    %cst_108 = arith.constant dense<0.000000e+00> : vector<8x8xf32>
    %155 = tpu.matmul %153, %154, %cst_108 {dimension_numbers = #tpu.dot_dimension_numbers<[1], [1], [0], [0], [0, 0, 1, 0], [], []>} : vector<8x4xbf16>, vector<8x4xbf16>, vector<8x8xf32> -> vector<8x8xf32>
    %cst_109 = arith.constant dense<0xFF800000> : vector<8xf32>
    %156 = vector.multi_reduction <maximumf>, %155, %cst_109 [1] : vector<8x8xf32> to vector<8xf32>
    %157 = vector.shape_cast %156 : vector<8xf32> to vector<8x1xf32>
    %158 = vector.broadcast %157 : vector<8x1xf32> to vector<8x8xf32>
    %159 = arith.subf %155, %158 : vector<8x8xf32>
    %160 = math.exp %159 : vector<8x8xf32>
    %cst_110 = arith.constant dense<0.000000e+00> : vector<8xf32>
    %161 = vector.multi_reduction <add>, %160, %cst_110 [1] : vector<8x8xf32> to vector<8xf32>
    %162 = vector.shape_cast %161 : vector<8xf32> to vector<8x1xf32>
    %163 = tpu.reciprocal %162 : vector<8x1xf32> -> vector<8x1xf32>
    %164 = vector.broadcast %163 : vector<8x1xf32> to vector<8x8xf32>
    %165 = arith.mulf %160, %164 : vector<8x8xf32>
    %166 = arith.truncf %165 : vector<8x8xf32> to vector<8x8xbf16>
    %167 = arith.truncf %152 : vector<8x4xf32> to vector<8x4xbf16>
    %cst_111 = arith.constant dense<0.000000e+00> : vector<8x4xf32>
    %168 = tpu.matmul %166, %167, %cst_111 {dimension_numbers = #tpu.dot_dimension_numbers<[1], [0], [0], [1], [0, 0, 1, 1], [], []>} : vector<8x8xbf16>, vector<8x4xbf16>, vector<8x4xf32> -> vector<8x4xf32>
    %169 = arith.truncf %168 : vector<8x4xf32> to vector<8x4xbf16>
    %c3_112 = arith.constant 3 : index
    %c0_113 = arith.constant 0 : index
    %c0_114 = arith.constant 0 : index
    %170 = vector.load %arg8[%c3_112, %c0_113, %c0_114] : memref<8x4x32xbf16, #tpu.memory_space<vmem>>, vector<1x4x32xbf16>
    %171 = vector.shape_cast %170 : vector<1x4x32xbf16> to vector<4x32xbf16>
    %cst_115 = arith.constant dense<0.000000e+00> : vector<8x32xf32>
    %172 = tpu.matmul %169, %171, %cst_115 {dimension_numbers = #tpu.dot_dimension_numbers<[1], [0], [0], [1], [0, 0, 1, 1], [], []>} : vector<8x4xbf16>, vector<4x32xbf16>, vector<8x32xf32> -> vector<8x32xf32>
    %173 = arith.addf %131, %172 : vector<8x32xf32>
    %c4 = arith.constant 4 : index
    %c0_116 = arith.constant 0 : index
    %c0_117 = arith.constant 0 : index
    %174 = vector.load %arg2[%c4, %c0_116, %c0_117] : memref<8x4x32xbf16, #tpu.memory_space<vmem>>, vector<1x4x32xbf16>
    %175 = vector.shape_cast %174 : vector<1x4x32xbf16> to vector<4x32xbf16>
    %cst_118 = arith.constant dense<0.000000e+00> : vector<8x4xf32>
    %176 = tpu.matmul %2, %175, %cst_118 {dimension_numbers = #tpu.dot_dimension_numbers<[1], [1], [0], [0], [0, 0, 1, 0], [], []>} : vector<8x32xbf16>, vector<4x32xbf16>, vector<8x4xf32> -> vector<8x4xf32>
    %c4_119 = arith.constant 4 : index
    %c0_120 = arith.constant 0 : index
    %c0_121 = arith.constant 0 : index
    %177 = vector.load %arg5[%c4_119, %c0_120, %c0_121] : memref<8x1x4xf32, #tpu.memory_space<vmem>>, vector<1x1x4xf32>
    %178 = vector.shape_cast %177 : vector<1x1x4xf32> to vector<1x4xf32>
    %179 = vector.broadcast %178 : vector<1x4xf32> to vector<8x4xf32>
    %180 = arith.addf %176, %179 : vector<8x4xf32>
    %c4_122 = arith.constant 4 : index
    %c0_123 = arith.constant 0 : index
    %c0_124 = arith.constant 0 : index
    %181 = vector.load %arg3[%c4_122, %c0_123, %c0_124] : memref<8x4x32xbf16, #tpu.memory_space<vmem>>, vector<1x4x32xbf16>
    %182 = vector.shape_cast %181 : vector<1x4x32xbf16> to vector<4x32xbf16>
    %cst_125 = arith.constant dense<0.000000e+00> : vector<8x4xf32>
    %183 = tpu.matmul %2, %182, %cst_125 {dimension_numbers = #tpu.dot_dimension_numbers<[1], [1], [0], [0], [0, 0, 1, 0], [], []>} : vector<8x32xbf16>, vector<4x32xbf16>, vector<8x4xf32> -> vector<8x4xf32>
    %c4_126 = arith.constant 4 : index
    %c0_127 = arith.constant 0 : index
    %c0_128 = arith.constant 0 : index
    %184 = vector.load %arg6[%c4_126, %c0_127, %c0_128] : memref<8x1x4xf32, #tpu.memory_space<vmem>>, vector<1x1x4xf32>
    %185 = vector.shape_cast %184 : vector<1x1x4xf32> to vector<1x4xf32>
    %186 = vector.broadcast %185 : vector<1x4xf32> to vector<8x4xf32>
    %187 = arith.addf %183, %186 : vector<8x4xf32>
    %c4_129 = arith.constant 4 : index
    %c0_130 = arith.constant 0 : index
    %c0_131 = arith.constant 0 : index
    %188 = vector.load %arg4[%c4_129, %c0_130, %c0_131] : memref<8x4x32xbf16, #tpu.memory_space<vmem>>, vector<1x4x32xbf16>
    %189 = vector.shape_cast %188 : vector<1x4x32xbf16> to vector<4x32xbf16>
    %cst_132 = arith.constant dense<0.000000e+00> : vector<8x4xf32>
    %190 = tpu.matmul %2, %189, %cst_132 {dimension_numbers = #tpu.dot_dimension_numbers<[1], [1], [0], [0], [0, 0, 1, 0], [], []>} : vector<8x32xbf16>, vector<4x32xbf16>, vector<8x4xf32> -> vector<8x4xf32>
    %c4_133 = arith.constant 4 : index
    %c0_134 = arith.constant 0 : index
    %c0_135 = arith.constant 0 : index
    %191 = vector.load %arg7[%c4_133, %c0_134, %c0_135] : memref<8x1x4xf32, #tpu.memory_space<vmem>>, vector<1x1x4xf32>
    %192 = vector.shape_cast %191 : vector<1x1x4xf32> to vector<1x4xf32>
    %193 = vector.broadcast %192 : vector<1x4xf32> to vector<8x4xf32>
    %194 = arith.addf %190, %193 : vector<8x4xf32>
    %195 = arith.truncf %180 : vector<8x4xf32> to vector<8x4xbf16>
    %196 = arith.truncf %187 : vector<8x4xf32> to vector<8x4xbf16>
    %cst_136 = arith.constant dense<0.000000e+00> : vector<8x8xf32>
    %197 = tpu.matmul %195, %196, %cst_136 {dimension_numbers = #tpu.dot_dimension_numbers<[1], [1], [0], [0], [0, 0, 1, 0], [], []>} : vector<8x4xbf16>, vector<8x4xbf16>, vector<8x8xf32> -> vector<8x8xf32>
    %cst_137 = arith.constant dense<0xFF800000> : vector<8xf32>
    %198 = vector.multi_reduction <maximumf>, %197, %cst_137 [1] : vector<8x8xf32> to vector<8xf32>
    %199 = vector.shape_cast %198 : vector<8xf32> to vector<8x1xf32>
    %200 = vector.broadcast %199 : vector<8x1xf32> to vector<8x8xf32>
    %201 = arith.subf %197, %200 : vector<8x8xf32>
    %202 = math.exp %201 : vector<8x8xf32>
    %cst_138 = arith.constant dense<0.000000e+00> : vector<8xf32>
    %203 = vector.multi_reduction <add>, %202, %cst_138 [1] : vector<8x8xf32> to vector<8xf32>
    %204 = vector.shape_cast %203 : vector<8xf32> to vector<8x1xf32>
    %205 = tpu.reciprocal %204 : vector<8x1xf32> -> vector<8x1xf32>
    %206 = vector.broadcast %205 : vector<8x1xf32> to vector<8x8xf32>
    %207 = arith.mulf %202, %206 : vector<8x8xf32>
    %208 = arith.truncf %207 : vector<8x8xf32> to vector<8x8xbf16>
    %209 = arith.truncf %194 : vector<8x4xf32> to vector<8x4xbf16>
    %cst_139 = arith.constant dense<0.000000e+00> : vector<8x4xf32>
    %210 = tpu.matmul %208, %209, %cst_139 {dimension_numbers = #tpu.dot_dimension_numbers<[1], [0], [0], [1], [0, 0, 1, 1], [], []>} : vector<8x8xbf16>, vector<8x4xbf16>, vector<8x4xf32> -> vector<8x4xf32>
    %211 = arith.truncf %210 : vector<8x4xf32> to vector<8x4xbf16>
    %c4_140 = arith.constant 4 : index
    %c0_141 = arith.constant 0 : index
    %c0_142 = arith.constant 0 : index
    %212 = vector.load %arg8[%c4_140, %c0_141, %c0_142] : memref<8x4x32xbf16, #tpu.memory_space<vmem>>, vector<1x4x32xbf16>
    %213 = vector.shape_cast %212 : vector<1x4x32xbf16> to vector<4x32xbf16>
    %cst_143 = arith.constant dense<0.000000e+00> : vector<8x32xf32>
    %214 = tpu.matmul %211, %213, %cst_143 {dimension_numbers = #tpu.dot_dimension_numbers<[1], [0], [0], [1], [0, 0, 1, 1], [], []>} : vector<8x4xbf16>, vector<4x32xbf16>, vector<8x32xf32> -> vector<8x32xf32>
    %215 = arith.addf %173, %214 : vector<8x32xf32>
    %c5 = arith.constant 5 : index
    %c0_144 = arith.constant 0 : index
    %c0_145 = arith.constant 0 : index
    %216 = vector.load %arg2[%c5, %c0_144, %c0_145] : memref<8x4x32xbf16, #tpu.memory_space<vmem>>, vector<1x4x32xbf16>
    %217 = vector.shape_cast %216 : vector<1x4x32xbf16> to vector<4x32xbf16>
    %cst_146 = arith.constant dense<0.000000e+00> : vector<8x4xf32>
    %218 = tpu.matmul %2, %217, %cst_146 {dimension_numbers = #tpu.dot_dimension_numbers<[1], [1], [0], [0], [0, 0, 1, 0], [], []>} : vector<8x32xbf16>, vector<4x32xbf16>, vector<8x4xf32> -> vector<8x4xf32>
    %c5_147 = arith.constant 5 : index
    %c0_148 = arith.constant 0 : index
    %c0_149 = arith.constant 0 : index
    %219 = vector.load %arg5[%c5_147, %c0_148, %c0_149] : memref<8x1x4xf32, #tpu.memory_space<vmem>>, vector<1x1x4xf32>
    %220 = vector.shape_cast %219 : vector<1x1x4xf32> to vector<1x4xf32>
    %221 = vector.broadcast %220 : vector<1x4xf32> to vector<8x4xf32>
    %222 = arith.addf %218, %221 : vector<8x4xf32>
    %c5_150 = arith.constant 5 : index
    %c0_151 = arith.constant 0 : index
    %c0_152 = arith.constant 0 : index
    %223 = vector.load %arg3[%c5_150, %c0_151, %c0_152] : memref<8x4x32xbf16, #tpu.memory_space<vmem>>, vector<1x4x32xbf16>
    %224 = vector.shape_cast %223 : vector<1x4x32xbf16> to vector<4x32xbf16>
    %cst_153 = arith.constant dense<0.000000e+00> : vector<8x4xf32>
    %225 = tpu.matmul %2, %224, %cst_153 {dimension_numbers = #tpu.dot_dimension_numbers<[1], [1], [0], [0], [0, 0, 1, 0], [], []>} : vector<8x32xbf16>, vector<4x32xbf16>, vector<8x4xf32> -> vector<8x4xf32>
    %c5_154 = arith.constant 5 : index
    %c0_155 = arith.constant 0 : index
    %c0_156 = arith.constant 0 : index
    %226 = vector.load %arg6[%c5_154, %c0_155, %c0_156] : memref<8x1x4xf32, #tpu.memory_space<vmem>>, vector<1x1x4xf32>
    %227 = vector.shape_cast %226 : vector<1x1x4xf32> to vector<1x4xf32>
    %228 = vector.broadcast %227 : vector<1x4xf32> to vector<8x4xf32>
    %229 = arith.addf %225, %228 : vector<8x4xf32>
    %c5_157 = arith.constant 5 : index
    %c0_158 = arith.constant 0 : index
    %c0_159 = arith.constant 0 : index
    %230 = vector.load %arg4[%c5_157, %c0_158, %c0_159] : memref<8x4x32xbf16, #tpu.memory_space<vmem>>, vector<1x4x32xbf16>
    %231 = vector.shape_cast %230 : vector<1x4x32xbf16> to vector<4x32xbf16>
    %cst_160 = arith.constant dense<0.000000e+00> : vector<8x4xf32>
    %232 = tpu.matmul %2, %231, %cst_160 {dimension_numbers = #tpu.dot_dimension_numbers<[1], [1], [0], [0], [0, 0, 1, 0], [], []>} : vector<8x32xbf16>, vector<4x32xbf16>, vector<8x4xf32> -> vector<8x4xf32>
    %c5_161 = arith.constant 5 : index
    %c0_162 = arith.constant 0 : index
    %c0_163 = arith.constant 0 : index
    %233 = vector.load %arg7[%c5_161, %c0_162, %c0_163] : memref<8x1x4xf32, #tpu.memory_space<vmem>>, vector<1x1x4xf32>
    %234 = vector.shape_cast %233 : vector<1x1x4xf32> to vector<1x4xf32>
    %235 = vector.broadcast %234 : vector<1x4xf32> to vector<8x4xf32>
    %236 = arith.addf %232, %235 : vector<8x4xf32>
    %237 = arith.truncf %222 : vector<8x4xf32> to vector<8x4xbf16>
    %238 = arith.truncf %229 : vector<8x4xf32> to vector<8x4xbf16>
    %cst_164 = arith.constant dense<0.000000e+00> : vector<8x8xf32>
    %239 = tpu.matmul %237, %238, %cst_164 {dimension_numbers = #tpu.dot_dimension_numbers<[1], [1], [0], [0], [0, 0, 1, 0], [], []>} : vector<8x4xbf16>, vector<8x4xbf16>, vector<8x8xf32> -> vector<8x8xf32>
    %cst_165 = arith.constant dense<0xFF800000> : vector<8xf32>
    %240 = vector.multi_reduction <maximumf>, %239, %cst_165 [1] : vector<8x8xf32> to vector<8xf32>
    %241 = vector.shape_cast %240 : vector<8xf32> to vector<8x1xf32>
    %242 = vector.broadcast %241 : vector<8x1xf32> to vector<8x8xf32>
    %243 = arith.subf %239, %242 : vector<8x8xf32>
    %244 = math.exp %243 : vector<8x8xf32>
    %cst_166 = arith.constant dense<0.000000e+00> : vector<8xf32>
    %245 = vector.multi_reduction <add>, %244, %cst_166 [1] : vector<8x8xf32> to vector<8xf32>
    %246 = vector.shape_cast %245 : vector<8xf32> to vector<8x1xf32>
    %247 = tpu.reciprocal %246 : vector<8x1xf32> -> vector<8x1xf32>
    %248 = vector.broadcast %247 : vector<8x1xf32> to vector<8x8xf32>
    %249 = arith.mulf %244, %248 : vector<8x8xf32>
    %250 = arith.truncf %249 : vector<8x8xf32> to vector<8x8xbf16>
    %251 = arith.truncf %236 : vector<8x4xf32> to vector<8x4xbf16>
    %cst_167 = arith.constant dense<0.000000e+00> : vector<8x4xf32>
    %252 = tpu.matmul %250, %251, %cst_167 {dimension_numbers = #tpu.dot_dimension_numbers<[1], [0], [0], [1], [0, 0, 1, 1], [], []>} : vector<8x8xbf16>, vector<8x4xbf16>, vector<8x4xf32> -> vector<8x4xf32>
    %253 = arith.truncf %252 : vector<8x4xf32> to vector<8x4xbf16>
    %c5_168 = arith.constant 5 : index
    %c0_169 = arith.constant 0 : index
    %c0_170 = arith.constant 0 : index
    %254 = vector.load %arg8[%c5_168, %c0_169, %c0_170] : memref<8x4x32xbf16, #tpu.memory_space<vmem>>, vector<1x4x32xbf16>
    %255 = vector.shape_cast %254 : vector<1x4x32xbf16> to vector<4x32xbf16>
    %cst_171 = arith.constant dense<0.000000e+00> : vector<8x32xf32>
    %256 = tpu.matmul %253, %255, %cst_171 {dimension_numbers = #tpu.dot_dimension_numbers<[1], [0], [0], [1], [0, 0, 1, 1], [], []>} : vector<8x4xbf16>, vector<4x32xbf16>, vector<8x32xf32> -> vector<8x32xf32>
    %257 = arith.addf %215, %256 : vector<8x32xf32>
    %c6 = arith.constant 6 : index
    %c0_172 = arith.constant 0 : index
    %c0_173 = arith.constant 0 : index
    %258 = vector.load %arg2[%c6, %c0_172, %c0_173] : memref<8x4x32xbf16, #tpu.memory_space<vmem>>, vector<1x4x32xbf16>
    %259 = vector.shape_cast %258 : vector<1x4x32xbf16> to vector<4x32xbf16>
    %cst_174 = arith.constant dense<0.000000e+00> : vector<8x4xf32>
    %260 = tpu.matmul %2, %259, %cst_174 {dimension_numbers = #tpu.dot_dimension_numbers<[1], [1], [0], [0], [0, 0, 1, 0], [], []>} : vector<8x32xbf16>, vector<4x32xbf16>, vector<8x4xf32> -> vector<8x4xf32>
    %c6_175 = arith.constant 6 : index
    %c0_176 = arith.constant 0 : index
    %c0_177 = arith.constant 0 : index
    %261 = vector.load %arg5[%c6_175, %c0_176, %c0_177] : memref<8x1x4xf32, #tpu.memory_space<vmem>>, vector<1x1x4xf32>
    %262 = vector.shape_cast %261 : vector<1x1x4xf32> to vector<1x4xf32>
    %263 = vector.broadcast %262 : vector<1x4xf32> to vector<8x4xf32>
    %264 = arith.addf %260, %263 : vector<8x4xf32>
    %c6_178 = arith.constant 6 : index
    %c0_179 = arith.constant 0 : index
    %c0_180 = arith.constant 0 : index
    %265 = vector.load %arg3[%c6_178, %c0_179, %c0_180] : memref<8x4x32xbf16, #tpu.memory_space<vmem>>, vector<1x4x32xbf16>
    %266 = vector.shape_cast %265 : vector<1x4x32xbf16> to vector<4x32xbf16>
    %cst_181 = arith.constant dense<0.000000e+00> : vector<8x4xf32>
    %267 = tpu.matmul %2, %266, %cst_181 {dimension_numbers = #tpu.dot_dimension_numbers<[1], [1], [0], [0], [0, 0, 1, 0], [], []>} : vector<8x32xbf16>, vector<4x32xbf16>, vector<8x4xf32> -> vector<8x4xf32>
    %c6_182 = arith.constant 6 : index
    %c0_183 = arith.constant 0 : index
    %c0_184 = arith.constant 0 : index
    %268 = vector.load %arg6[%c6_182, %c0_183, %c0_184] : memref<8x1x4xf32, #tpu.memory_space<vmem>>, vector<1x1x4xf32>
    %269 = vector.shape_cast %268 : vector<1x1x4xf32> to vector<1x4xf32>
    %270 = vector.broadcast %269 : vector<1x4xf32> to vector<8x4xf32>
    %271 = arith.addf %267, %270 : vector<8x4xf32>
    %c6_185 = arith.constant 6 : index
    %c0_186 = arith.constant 0 : index
    %c0_187 = arith.constant 0 : index
    %272 = vector.load %arg4[%c6_185, %c0_186, %c0_187] : memref<8x4x32xbf16, #tpu.memory_space<vmem>>, vector<1x4x32xbf16>
    %273 = vector.shape_cast %272 : vector<1x4x32xbf16> to vector<4x32xbf16>
    %cst_188 = arith.constant dense<0.000000e+00> : vector<8x4xf32>
    %274 = tpu.matmul %2, %273, %cst_188 {dimension_numbers = #tpu.dot_dimension_numbers<[1], [1], [0], [0], [0, 0, 1, 0], [], []>} : vector<8x32xbf16>, vector<4x32xbf16>, vector<8x4xf32> -> vector<8x4xf32>
    %c6_189 = arith.constant 6 : index
    %c0_190 = arith.constant 0 : index
    %c0_191 = arith.constant 0 : index
    %275 = vector.load %arg7[%c6_189, %c0_190, %c0_191] : memref<8x1x4xf32, #tpu.memory_space<vmem>>, vector<1x1x4xf32>
    %276 = vector.shape_cast %275 : vector<1x1x4xf32> to vector<1x4xf32>
    %277 = vector.broadcast %276 : vector<1x4xf32> to vector<8x4xf32>
    %278 = arith.addf %274, %277 : vector<8x4xf32>
    %279 = arith.truncf %264 : vector<8x4xf32> to vector<8x4xbf16>
    %280 = arith.truncf %271 : vector<8x4xf32> to vector<8x4xbf16>
    %cst_192 = arith.constant dense<0.000000e+00> : vector<8x8xf32>
    %281 = tpu.matmul %279, %280, %cst_192 {dimension_numbers = #tpu.dot_dimension_numbers<[1], [1], [0], [0], [0, 0, 1, 0], [], []>} : vector<8x4xbf16>, vector<8x4xbf16>, vector<8x8xf32> -> vector<8x8xf32>
    %cst_193 = arith.constant dense<0xFF800000> : vector<8xf32>
    %282 = vector.multi_reduction <maximumf>, %281, %cst_193 [1] : vector<8x8xf32> to vector<8xf32>
    %283 = vector.shape_cast %282 : vector<8xf32> to vector<8x1xf32>
    %284 = vector.broadcast %283 : vector<8x1xf32> to vector<8x8xf32>
    %285 = arith.subf %281, %284 : vector<8x8xf32>
    %286 = math.exp %285 : vector<8x8xf32>
    %cst_194 = arith.constant dense<0.000000e+00> : vector<8xf32>
    %287 = vector.multi_reduction <add>, %286, %cst_194 [1] : vector<8x8xf32> to vector<8xf32>
    %288 = vector.shape_cast %287 : vector<8xf32> to vector<8x1xf32>
    %289 = tpu.reciprocal %288 : vector<8x1xf32> -> vector<8x1xf32>
    %290 = vector.broadcast %289 : vector<8x1xf32> to vector<8x8xf32>
    %291 = arith.mulf %286, %290 : vector<8x8xf32>
    %292 = arith.truncf %291 : vector<8x8xf32> to vector<8x8xbf16>
    %293 = arith.truncf %278 : vector<8x4xf32> to vector<8x4xbf16>
    %cst_195 = arith.constant dense<0.000000e+00> : vector<8x4xf32>
    %294 = tpu.matmul %292, %293, %cst_195 {dimension_numbers = #tpu.dot_dimension_numbers<[1], [0], [0], [1], [0, 0, 1, 1], [], []>} : vector<8x8xbf16>, vector<8x4xbf16>, vector<8x4xf32> -> vector<8x4xf32>
    %295 = arith.truncf %294 : vector<8x4xf32> to vector<8x4xbf16>
    %c6_196 = arith.constant 6 : index
    %c0_197 = arith.constant 0 : index
    %c0_198 = arith.constant 0 : index
    %296 = vector.load %arg8[%c6_196, %c0_197, %c0_198] : memref<8x4x32xbf16, #tpu.memory_space<vmem>>, vector<1x4x32xbf16>
    %297 = vector.shape_cast %296 : vector<1x4x32xbf16> to vector<4x32xbf16>
    %cst_199 = arith.constant dense<0.000000e+00> : vector<8x32xf32>
    %298 = tpu.matmul %295, %297, %cst_199 {dimension_numbers = #tpu.dot_dimension_numbers<[1], [0], [0], [1], [0, 0, 1, 1], [], []>} : vector<8x4xbf16>, vector<4x32xbf16>, vector<8x32xf32> -> vector<8x32xf32>
    %299 = arith.addf %257, %298 : vector<8x32xf32>
    %c7 = arith.constant 7 : index
    %c0_200 = arith.constant 0 : index
    %c0_201 = arith.constant 0 : index
    %300 = vector.load %arg2[%c7, %c0_200, %c0_201] : memref<8x4x32xbf16, #tpu.memory_space<vmem>>, vector<1x4x32xbf16>
    %301 = vector.shape_cast %300 : vector<1x4x32xbf16> to vector<4x32xbf16>
    %cst_202 = arith.constant dense<0.000000e+00> : vector<8x4xf32>
    %302 = tpu.matmul %2, %301, %cst_202 {dimension_numbers = #tpu.dot_dimension_numbers<[1], [1], [0], [0], [0, 0, 1, 0], [], []>} : vector<8x32xbf16>, vector<4x32xbf16>, vector<8x4xf32> -> vector<8x4xf32>
    %c7_203 = arith.constant 7 : index
    %c0_204 = arith.constant 0 : index
    %c0_205 = arith.constant 0 : index
    %303 = vector.load %arg5[%c7_203, %c0_204, %c0_205] : memref<8x1x4xf32, #tpu.memory_space<vmem>>, vector<1x1x4xf32>
    %304 = vector.shape_cast %303 : vector<1x1x4xf32> to vector<1x4xf32>
    %305 = vector.broadcast %304 : vector<1x4xf32> to vector<8x4xf32>
    %306 = arith.addf %302, %305 : vector<8x4xf32>
    %c7_206 = arith.constant 7 : index
    %c0_207 = arith.constant 0 : index
    %c0_208 = arith.constant 0 : index
    %307 = vector.load %arg3[%c7_206, %c0_207, %c0_208] : memref<8x4x32xbf16, #tpu.memory_space<vmem>>, vector<1x4x32xbf16>
    %308 = vector.shape_cast %307 : vector<1x4x32xbf16> to vector<4x32xbf16>
    %cst_209 = arith.constant dense<0.000000e+00> : vector<8x4xf32>
    %309 = tpu.matmul %2, %308, %cst_209 {dimension_numbers = #tpu.dot_dimension_numbers<[1], [1], [0], [0], [0, 0, 1, 0], [], []>} : vector<8x32xbf16>, vector<4x32xbf16>, vector<8x4xf32> -> vector<8x4xf32>
    %c7_210 = arith.constant 7 : index
    %c0_211 = arith.constant 0 : index
    %c0_212 = arith.constant 0 : index
    %310 = vector.load %arg6[%c7_210, %c0_211, %c0_212] : memref<8x1x4xf32, #tpu.memory_space<vmem>>, vector<1x1x4xf32>
    %311 = vector.shape_cast %310 : vector<1x1x4xf32> to vector<1x4xf32>
    %312 = vector.broadcast %311 : vector<1x4xf32> to vector<8x4xf32>
    %313 = arith.addf %309, %312 : vector<8x4xf32>
    %c7_213 = arith.constant 7 : index
    %c0_214 = arith.constant 0 : index
    %c0_215 = arith.constant 0 : index
    %314 = vector.load %arg4[%c7_213, %c0_214, %c0_215] : memref<8x4x32xbf16, #tpu.memory_space<vmem>>, vector<1x4x32xbf16>
    %315 = vector.shape_cast %314 : vector<1x4x32xbf16> to vector<4x32xbf16>
    %cst_216 = arith.constant dense<0.000000e+00> : vector<8x4xf32>
    %316 = tpu.matmul %2, %315, %cst_216 {dimension_numbers = #tpu.dot_dimension_numbers<[1], [1], [0], [0], [0, 0, 1, 0], [], []>} : vector<8x32xbf16>, vector<4x32xbf16>, vector<8x4xf32> -> vector<8x4xf32>
    %c7_217 = arith.constant 7 : index
    %c0_218 = arith.constant 0 : index
    %c0_219 = arith.constant 0 : index
    %317 = vector.load %arg7[%c7_217, %c0_218, %c0_219] : memref<8x1x4xf32, #tpu.memory_space<vmem>>, vector<1x1x4xf32>
    %318 = vector.shape_cast %317 : vector<1x1x4xf32> to vector<1x4xf32>
    %319 = vector.broadcast %318 : vector<1x4xf32> to vector<8x4xf32>
    %320 = arith.addf %316, %319 : vector<8x4xf32>
    %321 = arith.truncf %306 : vector<8x4xf32> to vector<8x4xbf16>
    %322 = arith.truncf %313 : vector<8x4xf32> to vector<8x4xbf16>
    %cst_220 = arith.constant dense<0.000000e+00> : vector<8x8xf32>
    %323 = tpu.matmul %321, %322, %cst_220 {dimension_numbers = #tpu.dot_dimension_numbers<[1], [1], [0], [0], [0, 0, 1, 0], [], []>} : vector<8x4xbf16>, vector<8x4xbf16>, vector<8x8xf32> -> vector<8x8xf32>
    %cst_221 = arith.constant dense<0xFF800000> : vector<8xf32>
    %324 = vector.multi_reduction <maximumf>, %323, %cst_221 [1] : vector<8x8xf32> to vector<8xf32>
    %325 = vector.shape_cast %324 : vector<8xf32> to vector<8x1xf32>
    %326 = vector.broadcast %325 : vector<8x1xf32> to vector<8x8xf32>
    %327 = arith.subf %323, %326 : vector<8x8xf32>
    %328 = math.exp %327 : vector<8x8xf32>
    %cst_222 = arith.constant dense<0.000000e+00> : vector<8xf32>
    %329 = vector.multi_reduction <add>, %328, %cst_222 [1] : vector<8x8xf32> to vector<8xf32>
    %330 = vector.shape_cast %329 : vector<8xf32> to vector<8x1xf32>
    %331 = tpu.reciprocal %330 : vector<8x1xf32> -> vector<8x1xf32>
    %332 = vector.broadcast %331 : vector<8x1xf32> to vector<8x8xf32>
    %333 = arith.mulf %328, %332 : vector<8x8xf32>
    %334 = arith.truncf %333 : vector<8x8xf32> to vector<8x8xbf16>
    %335 = arith.truncf %320 : vector<8x4xf32> to vector<8x4xbf16>
    %cst_223 = arith.constant dense<0.000000e+00> : vector<8x4xf32>
    %336 = tpu.matmul %334, %335, %cst_223 {dimension_numbers = #tpu.dot_dimension_numbers<[1], [0], [0], [1], [0, 0, 1, 1], [], []>} : vector<8x8xbf16>, vector<8x4xbf16>, vector<8x4xf32> -> vector<8x4xf32>
    %337 = arith.truncf %336 : vector<8x4xf32> to vector<8x4xbf16>
    %c7_224 = arith.constant 7 : index
    %c0_225 = arith.constant 0 : index
    %c0_226 = arith.constant 0 : index
    %338 = vector.load %arg8[%c7_224, %c0_225, %c0_226] : memref<8x4x32xbf16, #tpu.memory_space<vmem>>, vector<1x4x32xbf16>
    %339 = vector.shape_cast %338 : vector<1x4x32xbf16> to vector<4x32xbf16>
    %cst_227 = arith.constant dense<0.000000e+00> : vector<8x32xf32>
    %340 = tpu.matmul %337, %339, %cst_227 {dimension_numbers = #tpu.dot_dimension_numbers<[1], [0], [0], [1], [0, 0, 1, 1], [], []>} : vector<8x4xbf16>, vector<4x32xbf16>, vector<8x32xf32> -> vector<8x32xf32>
    %341 = arith.addf %299, %340 : vector<8x32xf32>
    %c0_228 = arith.constant 0 : index
    %c0_229 = arith.constant 0 : index
    %c0_230 = arith.constant 0 : index
    %342 = vector.load %arg10[%c0_228, %c0_229, %c0_230] : memref<1x8x32xf32, #tpu.memory_space<vmem>>, vector<1x8x32xf32>
    %343 = vector.shape_cast %342 : vector<1x8x32xf32> to vector<8x32xf32>
    %344 = vector.shape_cast %341 : vector<8x32xf32> to vector<1x8x32xf32>
    tpu.vector_store %arg10[%c0_228, %c0_229, %c0_230], %344 {strides = array<i32>} : memref<1x8x32xf32, #tpu.memory_space<vmem>>, vector<1x8x32xf32>,
    return
  }
  func.func @transform_0(%arg0: i32) -> (i32, i32, i32) {
    %c0_i32 = arith.constant 0 : i32
    %c0_i32_0 = arith.constant 0 : i32
    %c0_i32_1 = arith.constant 0 : i32
    return %arg0, %c0_i32, %c0_i32_0 : i32, i32, i32
  }
  func.func @transform_1(%arg0: i32) -> (i32, i32, i32) {
    %c0_i32 = arith.constant 0 : i32
    %c0_i32_0 = arith.constant 0 : i32
    %c0_i32_1 = arith.constant 0 : i32
    %c0_i32_2 = arith.constant 0 : i32
    return %c0_i32, %c0_i32_0, %c0_i32_1 : i32, i32, i32
  }
  func.func @transform_2(%arg0: i32) -> (i32, i32, i32) {
    %c0_i32 = arith.constant 0 : i32
    %c0_i32_0 = arith.constant 0 : i32
    %c0_i32_1 = arith.constant 0 : i32
    %c0_i32_2 = arith.constant 0 : i32
    return %c0_i32, %c0_i32_0, %c0_i32_1 : i32, i32, i32
  }
  func.func @transform_3(%arg0: i32) -> (i32, i32, i32) {
    %c0_i32 = arith.constant 0 : i32
    %c0_i32_0 = arith.constant 0 : i32
    %c0_i32_1 = arith.constant 0 : i32
    %c0_i32_2 = arith.constant 0 : i32
    return %c0_i32, %c0_i32_0, %c0_i32_1 : i32, i32, i32
  }
  func.func @transform_4(%arg0: i32) -> (i32, i32, i32) {
    %c0_i32 = arith.constant 0 : i32
    %c0_i32_0 = arith.constant 0 : i32
    %c0_i32_1 = arith.constant 0 : i32
    %c0_i32_2 = arith.constant 0 : i32
    return %c0_i32, %c0_i32_0, %c0_i32_1 : i32, i32, i32
  }
  func.func @transform_5(%arg0: i32) -> (i32, i32, i32) {
    %c0_i32 = arith.constant 0 : i32
    %c0_i32_0 = arith.constant 0 : i32
    %c0_i32_1 = arith.constant 0 : i32
    %c0_i32_2 = arith.constant 0 : i32
    return %c0_i32, %c0_i32_0, %c0_i32_1 : i32, i32, i32
  }
  func.func @transform_6(%arg0: i32) -> (i32, i32, i32) {
    %c0_i32 = arith.constant 0 : i32
    %c0_i32_0 = arith.constant 0 : i32
    %c0_i32_1 = arith.constant 0 : i32
    %c0_i32_2 = arith.constant 0 : i32
    return %c0_i32, %c0_i32_0, %c0_i32_1 : i32, i32, i32
  }
  func.func @transform_7(%arg0: i32) -> (i32, i32, i32) {
    %c0_i32 = arith.constant 0 : i32
    %c0_i32_0 = arith.constant 0 : i32
    %c0_i32_1 = arith.constant 0 : i32
    %c0_i32_2 = arith.constant 0 : i32
    return %c0_i32, %c0_i32_0, %c0_i32_1 : i32, i32, i32
  }
  func.func @transform_8(%arg0: i32) -> (i32, i32) {
    %c0_i32 = arith.constant 0 : i32
    %c0_i32_0 = arith.constant 0 : i32
    %c0_i32_1 = arith.constant 0 : i32
    return %c0_i32, %c0_i32_0 : i32, i32
  }
  func.func @transform_9(%arg0: i32) -> (i32, i32, i32) {
    %c0_i32 = arith.constant 0 : i32
    %c0_i32_0 = arith.constant 0 : i32
    %c0_i32_1 = arith.constant 0 : i32
    return %arg0, %c0_i32, %c0_i32_0 : i32, i32, i32
  }
}

</mosaic_0001>

<bundles_post_ra>
// kernel: tpu_custom_call.1
= control target key start
LH: loop header
LB: loop body
LE: loop exit
PB: predicated region body
PF: predicated region fallthrough
CT: control target
= control target key end

     0   :  { %14 = vsyncpa [#allocation3], 0  ;;  %s4387_s0 = inlined_call_operand.vmem [shape: f32[2,8,32], index: 0, kind: input, shape index: {}]   ;;  %s4388_s1 = inlined_call_operand.vmem [shape: bf16[8,4,32], index: 1, kind: input, shape index: {}]   ;;  %s4389_s2 = inlined_call_operand.hbm [shape: bf16[8,4,32], index: 2, kind: input, shape index: {}]   ;;  %s4390_s3 = inlined_call_operand.hbm [shape: bf16[8,4,32], index: 3, kind: input, shape index: {}]   ;;  %s4391_s4 = inlined_call_operand.vmem [shape: f32[8,1,4], index: 4, kind: input, shape index: {}]   ;;  %s4392_s5 = inlined_call_operand.vmem [shape: f32[8,1,4], index: 5, kind: input, shape index: {}]   ;;  %s4393_s6 = inlined_call_operand.vmem [shape: f32[8,1,4], index: 6, kind: input, shape index: {}]   ;;  %s4394_s7 = inlined_call_operand.vmem [shape: bf16[8,4,32], index: 7, kind: input, shape index: {}]   ;;  %s4395_s8 = inlined_call_operand.vmem [shape: f32[1,32], index: 8, kind: input, shape index: {}]   ;;  %s4396_s9 = inlined_call_operand.hbm [shape: f32[2,8,32], index: 9, kind: output, shape index: {}]  }
   0x1   :  { %15 = vsyncpa [#allocation6], 0 }
   0x2   :  { %16 = vsyncpa [#allocation4], 0 }
   0x3   :  { %18 = vsyncpa [#allocation4 + $0x1], 0  ;;  %s3809_s30 = smov 0   ;;  %s3811_s10 = smov 0  }
   0x4   :  { %s3813_s11 = smov 0   ;;  %s3815_s12 = smov 0  }
   0x5 LB: > { %4403 = sst [smem:[#allocation11_spill]] %s3746_s11  ;;  %s3830_s13 = sadd.s32 4294967295, %s3750_s12   ;;  %s3750_s12 = sphi %s3815_s12, %s4417_s12   ;;  %s3746_s11 = sphi %s3813_s11, %s4419_s11   ;;  %s3742_s10 = sphi %s3811_s10, %s4421_s10   ;;  %s3738_s30 = sphi %s3809_s30, %s4420_s30  }
   0x6   : > { %s2993_s14 = sadd.s32 4294967294, %s3750_s12   ;;  %s3834_s15 = sadd.s32 1, %s3750_s12  }
   0x7   : > { %4404 = sst [smem:[#allocation12_spill]] %s3834_s15  ;;  %s225_s16 = sadd.s32 1, %s3746_s11 }
   0x8   : > { %s222_s17 = ssub.s32 %s3750_s12, %s3834_s15  ;;  %p235_p0 = scmp.ne.s32.totalorder %s3746_s11, %s3742_s10 }
   0x9   : > { %p223_p1 = scmp.eq.s32.totalorder %s222_s17, 0  ;;  %p236_p2 = scmp.eq.s32.totalorder %s3830_s13, 1 }
   0xa   : > { %p241_p3 = scmp.ne.s32.totalorder %s3742_s10, %s3738_s30  ;;  %p242_p4 = scmp.eq.s32.totalorder %s2993_s14, 1 }
   0xb   : > { %s3845_s18 = scalar_select %p223_p1, %s3746_s11, %s225_s16  }
   0xc   : > { %p3847_p5 = por %p236_p2, %p235_p0  ;;  %p3851_p6 = por %p242_p4, %p241_p3 }
   0xd   : > { %4405 = sst [smem:[#allocation13_spill]] %s3845_s18  ;;  %p2994_p7 = scmp.ge.s32.totalorder %s3750_s12, 1 }
   0xe   : > { %s4406_s19 = scalar_select %p3847_p5, 1, 0 }
   0xf   : > { %s4407_s20 = scalar_select %p3851_p6, 1, 0 }
  0x10   : > { %p249_p8 = scmp.lt.s32.totalorder %s3750_s12, 3  ;;  %p4397_p9 = scmp.eq.s32.totalorder %s3830_s13, 0 }
  0x11   : > { %s3752_s22 = smov [#allocation2]   ;;  %s3753_s25 = smov [#allocation5]  }
  0x12   : > { %p3858_p10 = pnand %p2994_p7, %p249_p8  ;;  %s264_s23 = sshll.u32 %s3752_s22, 4  ;;  %s265_s23 = int_to_ptr.vmem [resolvable:$true] %s264_s23 }
  0x13   : > { %s277_s26 = sshll.u32 %s3753_s25, 4  ;;  %s3624_s29 = scalar_lea.hbm %s4389_s2, 256  ;;  %s3870_s26 = int_to_ptr.vmem [resolvable:$true] %s277_s26 }
  0x14   : > { %s4408_s21 = scalar_select %p3858_p10, 1, 0 }
  0x15   : > { %p3538_p11 = pneg %p3858_p10  ;;  %p3625_p13 = scmp.ne.s32.totalorder %s4389_s2, %s3624_s29 }
  0x16   : > { %p3631_p3 = scmp.lt.u32.totalorder %s3624_s29, %s4389_s2 }
  0x17   : > { %p3866_p12 = pnand %p4397_p9, %p3538_p11 }
  0x19   : > { %p3626_p0 = pneg %p3866_p12 }
  0x1b   : > { %p3627_p1 = pnand %p3626_p0, %p3625_p13 }
  0x1d   : > { %p3628_p2 = pneg %p3627_p1 }
  0x1f   : > { %p3633_p4 = pnand %p3631_p3, %p3628_p2 }
  0x21   : > { %3636 = shalt.err (!%p3633_p4)
}
  0x22   : > { %s3637_s25 = scalar_lea.vmem %s265_s23, 256  ;;  %p3645_p9 = scmp.lt.s32.totalorder %s265_s23, %s265_s23 }
  0x23   : > { %p3638_p7 = scmp.ne.s32.totalorder %s265_s23, %s3637_s25  ;;  %p3646_p6 = scmp.lt.s32.totalorder %s3637_s25, %s3637_s25 }
  0x25   : > { %p3640_p8 = pnand %p3638_p7, %p3626_p0  ;;  %p3647_p5 = por %p3646_p6, %p3645_p9 }
  0x27   : > { %p3641_p11 = pneg %p3640_p8 }
  0x29   : > { %p3648_p10 = pnand %p3647_p5, %p3641_p11 }
  0x2b   : > { %3651 = shalt.err (!%p3648_p10)
}
  0x2c   : > { %s3754_s27 = smov 32   ;;  %s3755_s28 = smov 2  }
  0x2d   : > { %3541 = dma.hbm_to_vmem [thread:$0]  (!%p3866_p12), %s4389_s2, 256, %s265_s23, [#allocation3], %s3754_s27, %s3754_s27, %s3755_s28  }
  0x2e   : > { %s3652_s22 = scalar_lea.hbm %s4390_s3, 256 }
  0x2f   : > { %p3653_p13 = scmp.ne.s32.totalorder %s4390_s3, %s3652_s22  ;;  %p3659_p9 = scmp.lt.u32.totalorder %s3652_s22, %s4390_s3 }
  0x31   : > { %p3655_p5 = pnand %p3653_p13, %p3626_p0 }
  0x33   : > { %p3656_p6 = pneg %p3655_p5 }
  0x35   : > { %p3661_p10 = pnand %p3659_p9, %p3656_p6 }
  0x37   : > { %3664 = shalt.err (!%p3661_p10)
}
  0x38   : > { %s3665_s23 = scalar_lea.vmem %s3870_s26, 256  ;;  %p3673_p4 = scmp.lt.s32.totalorder %s3870_s26, %s3870_s26 }
  0x39   : > { %p3666_p1 = scmp.ne.s32.totalorder %s3870_s26, %s3665_s23  ;;  %p3674_p7 = scmp.lt.s32.totalorder %s3665_s23, %s3665_s23 }
  0x3b   : > { %p3668_p2 = pnand %p3666_p1, %p3626_p0  ;;  %p3675_p8 = por %p3674_p7, %p3673_p4 }
  0x3d   : > { %p3669_p3 = pneg %p3668_p2 }
  0x3f   : > { %p3676_p11 = pnand %p3675_p8, %p3669_p3 }
  0x41   : > { %3679 = shalt.err (!%p3676_p11)
}
  0x42   : > { %3544 = dma.hbm_to_vmem [thread:$0]  (!%p3866_p12), %s4390_s3, 256, %s3870_s26, [#allocation6], %s3754_s27, %s3754_s27, %s3755_s28  }
  0x43   : > { %p4410_p13 = scmp.ne.s32.totalorder %s4408_s21, 0 }
  0x44   : > { %p4411_p5 = scmp.eq.s32.totalorder (!%p4410_p13), %s3830_s13, 0 }
  0x45   : > { %315 = sbr.rel (%p4410_p13) target bundleno = 8103 (0x1fa7), region = 56 }
  0x4c   : > { %3725 = dma.done.wait (%p4411_p5), [#allocation3], 256   ;;  %p4412_p0 = pmov %p4411_p5 }
  0x4e   : > { %3727 = vsyncadd (%p4412_p0), [#allocation3], 4294967040  ;;  %p4413_p6 = pmov %p4412_p0 }
  0x4f   : > { %p4414_p9 = pmov %p4412_p0 }
  0x50   : > { %3729 = dma.done.wait (%p4413_p6), [#allocation6], 256  }
  0x51   : > { %3731 = vsyncadd (%p4414_p9), [#allocation6], 4294967040  ;;  %p354_p10 = scmp.lt.s32.totalorder %s3830_s13, 1  ;;  %v3756_v0 = vmov 0.0   ;;  %vm3757_vm0 = vmmov 0   ;;  %vm376_vm1 = vcmask 261120  }
  0x52   : > { %3217 = vmatprep.subr.bf16.mxu1 %v3756_v0  ;;  %3211 = vmatprep.subr.bf16.mxu0 %v3756_v0  ;;  %v423_v1 = vld [vmem:[#allocation2] sm:$0x3]  ;;  %vm527_vm2 = vcmask 31744   ;;  %v474_v22 = vld [vmem:[#allocation5] sm:$0x3]  ;;  %vm574_vm3 = vcmask 64512  }
  0x53   : > { %3219 = vmatprep.mubr.msk.bf16.mxu1 %vm3757_vm0, %v3756_v0  ;;  %s355_s18 = scalar_select %p354_p10, %s3830_s13, 1  ;;  %3213 = vmatprep.mubr.msk.bf16.mxu0 %vm3757_vm0, %v3756_v0  ;;  %v368_v2 = vld [vmem:[%s4388_s1] sm:$0x3]  ;;  %v432_v3 = vsel %vm376_vm1, %v423_v1, 0  ;;  %v483_v23 = vsel %vm376_vm1, %v474_v22, 0  ;;  %vm591_vm4 = vcmask 1043456  }
  0x54   : > { %v381_v4 = vsel %vm376_vm1, %v368_v2, 0  ;;  %3218 = vmatpush3.bf16.xpose.msra.mxu1 %v432_v3  ;;  %v3006_v7 = vld [vmem:[%s4392_s5] ss:$0 sm:$0xff]  ;;  %vm640_vm5 = vcmask 1041408   ;;  %v3013_v48 = vld [vmem:[%s4388_s1 + $0x2] sm:$0x3] }
  0x55   : > { %s3002_s21 = sshll.u32 %s355_s18, 3  ;;  %3212 = vmatpush3.bf16.xpose.msra.mxu0 %v381_v4  ;;  %3229 = vmatprep.subr.bf16.mxu1 %v3756_v0  ;;  %v3004_v14 = vld [vmem:[%s4391_s4] ss:$0 sm:$0xff]  ;;  %v696_v49 = vsel %vm376_vm1, %v3013_v48, 0  ;;  %v739_v50 = vld [vmem:[#allocation2 + $0x2] sm:$0x3] }
  0x56   : > { %s357_s27 = scalar_lea.vmem %s4387_s0, %s3002_s21  ;;  %3223 = vmatprep.subr.bf16.mxu0 %v3756_v0  ;;  %v3008_v37 = vld [vmem:[%s4393_s6] ss:$0 sm:$0xff]  ;;  %v749_v54 = vsel %vm376_vm1, %v739_v50, 0  ;;  %v3018_v61 = vld [vmem:[%s4392_s5 + $0x1] ss:$0 sm:$0xff]  ;;  %s351_s22 = sand.u32 1, %s3742_s10  }
  0x57   : > { %v359_v5 = vld [vmem:[%s357_s27] sm:$0xff]  ;;  %s3001_s25 = sshll.u32 %s351_s22, 3  ;;  %s3112_s15 = sshll.u32 %s3830_s13, 7 }
  0x58   : > { %v3947_v6 = vpack.c.bf16 %v359_v5, %v359_v5  ;;  %v636_v42 = vld [vmem:[%s4394_s7] sm:$0x3]  ;;  %s353_s18 = scalar_lea.vmem [#allocation7], %s3001_s25  ;;  %s4344_s27 = scalar_lea.hbm %s4396_s9, %s3112_s15 }
  0x59   : > { %v642_v43 = vsel %vm640_vm5, %v636_v42, 0  ;;  %v3015_v3 = vld [vmem:[%s4391_s4 + $0x1] ss:$0 sm:$0xff]  ;;  %s2912_s21 = sshll.u32 %s353_s18, 4  ;;  %s2899_s13 = scalar_lea.sflag [#allocation4], %s351_s22  ;;  %s4346_s21 = int_to_ptr.vmem [resolvable:$true] %s2912_s21 }
  0x5a   : > { %s3680_s28 = scalar_lea.vmem %s4346_s21, 128  ;;  %p4415_p1 = scmp.ne.s32.totalorder %s4406_s19, 0 }
  0x5b   : > { %3220 = vmatmul.mubr.msk.bf16.vlgmr.msra.gmra.mrb[0].mxu1 %vm376_vm1, %v3947_v6  ;;  %p3681_p12 = scmp.ne.s32.totalorder %s4346_s21, %s3680_s28  ;;  %s3758_s29 = smov [#allocation7]  }
  0x5c   : > { %3214 = vmatmul.mubr.msk.bf16.vlgmr.msra.gmra.mrb[0].mxu0 %vm376_vm1, %v3947_v6  ;;  %3231 = vmatprep.mubr.msk.bf16.mxu1 %vm3757_vm0, %v3756_v0  ;;  %s3684_s14 = sshll.u32 %s3758_s29, 4  ;;  %s3685_s14 = int_to_ptr.vmem [resolvable:$false] %s3684_s14 }
  0x5d   : > { %3225 = vmatprep.mubr.msk.bf16.mxu0 %vm3757_vm0, %v3756_v0  ;;  %3224 = vmatpush3.bf16.xpose.msra.mxu0 %v483_v23  ;;  %p3682_p2 = pnand %p3681_p12, %p4415_p1  ;;  %s3686_s16 = scalar_lea.vmem %s3685_s14, 256 }
  0x5e   : > { %3235 = vmatprep.subr.bf16.mxu0 %v3756_v0  ;;  %p3687_p4 = scmp.lt.s32.totalorder %s4346_s21, %s3685_s14  ;;  %p3688_p7 = scmp.lt.s32.totalorder %s3686_s16, %s3680_s28 }
  0x5f   : > { %p3683_p3 = pneg %p3682_p2 }
  0x60   : > { %p3689_p8 = por %p3688_p7, %p3687_p4 }
  0x62   : > { %p3690_p11 = pnand %p3689_p8, %p3683_p3 }
  0x64   : > { %3226 = vmatmul.mubr.msk.bf16.vlgmr.msra.gmra.mrb[4].mxu0 %vm376_vm1, %v3947_v6 }
  0x65   : > { %3237 = vmatprep.mubr.msk.bf16.mxu0 %vm3757_vm0, %v3756_v0 }
 0x12e   : > { %v468_v8 = vpop.f32.mrb[0].mxu1 }
 0x12f   : > { %v417_v9 = vpop.f32.mrb[0].mxu0  ;;  %v469_v10 = vadd.f32 %v3006_v7, %v468_v8  ;;  %v3221_v11 = vpop.f32.mrb[1].mxu1 }
 0x130   : > { %v3215_v12 = vpop.f32.mrb[1].mxu0  ;;  %v471_v13 = vpop.f32.mrb[2].mxu1  ;;  %v418_v20 = vadd.f32 %v3004_v14, %v417_v9 }
 0x131   : > { %v420_v15 = vpop.f32.mrb[2].mxu0  ;;  %v526_v16 = vpack.c.bf16 %v469_v10, %v469_v10  ;;  %v3222_v17 = vpop.f32.mrb[3].mxu1  ;;  %v792_v10 = vld [vmem:[#allocation5 + $0x2] sm:$0x3] }
 0x132   : > { %v3216_v18 = vpop.f32.mrb[3].mxu0  ;;  %v525_v21 = vpack.c.bf16 %v418_v20, %v418_v20  ;;  %v802_v11 = vsel %vm376_vm1, %v792_v10, 0 }
 0x133   : > { %v532_v19 = vsel %vm527_vm2, %v526_v16, 0 }
 0x134   : > { %3230 = vmatpush3.bf16.xpose.msra.mxu1 %v532_v19 }
 0x135   : > { %3241 = vmatprep.subr.bf16.mxu1 %v3756_v0 }
 0x137   : > { %v519_v34 = vpop.f32.mrb[4].mxu0 }
 0x138   : > { %v3227_v35 = vpop.f32.mrb[5].mxu0  ;;  %v520_v39 = vadd.f32 %v3008_v37, %v519_v34 }
 0x139   : > { %v522_v36 = vpop.f32.mrb[6].mxu0 }
 0x13a   : > { %v3228_v38 = vpop.f32.mrb[7].mxu0  ;;  %v587_v40 = vpack.c.bf16 %v520_v39, %v520_v39  ;;  %v3027_v36 = vld [vmem:[%s4388_s1 + $0x4] sm:$0x3] }
 0x13b   : > { %3232 = vmatmul.mubr.msk.bf16.vlgmr.msra.gmra.mrb[4].mxu1 %vm527_vm2, %v525_v21  ;;  %v1012_v37 = vsel %vm376_vm1, %v3027_v36, 0  ;;  %v1055_v38 = vld [vmem:[#allocation2 + $0x4] sm:$0x3] }
 0x13c   : > { %3243 = vmatprep.mubr.msk.bf16.mxu1 %vm3757_vm0, %v3756_v0  ;;  %v593_v41 = vsel %vm591_vm4, %v587_v40, 0  ;;  %3242 = vmatpush3.bf16.msra.mxu1 %v642_v43  ;;  %v1065_v42 = vsel %vm376_vm1, %v1055_v38, 0 }
 0x13d   : > { %3236 = vmatpush3.bf16.msra.mxu0 %v593_v41  ;;  %3253 = vmatprep.subr.bf16.mxu1 %v3756_v0 }
 0x13e   : > { %3247 = vmatprep.subr.bf16.mxu0 %v3756_v0 }
 0x20e   : > { %v568_v24 = vpop.f32.mrb[4].mxu1 }
 0x20f   : > { %v3233_v25 = vpop.f32.mrb[5].mxu1  ;;  %v575_v26 = vsel %vm574_vm3, %v568_v24, -inf }
 0x210   : > { %576 = vmax.xlane.f32.xlu0 %v575_v26  ;;  %v571_v27 = vpop.f32.mrb[6].mxu1  ;;  %v3021_v25 = vld [vmem:[%s4393_s6 + $0x1] ss:$0 sm:$0xff] }
 0x211   : > { %v3234_v28 = vpop.f32.mrb[7].mxu1 }
 0x29d   : > { %v577_v29 = vpop.xlane.xlu0 %576 }
 0x29e   : > { %v578_v30 = vsub.f32 %v568_v24, %v577_v29 }
 0x2a0   : > { %v579_v31 = vmul.f32 1.442695, %v578_v30  ;;  %v3025_v30 = vld [vmem:[%s4394_s7 + $0x2] sm:$0x3] }
 0x2a2   : > { %3592 = vpow2.f32 %v579_v31  ;;  %v958_v31 = vsel %vm640_vm5, %v3025_v30, 0 }
 0x2ac   : > { %v3593_v32 = vpop.eup %3592 }
 0x2ad   : > { %v581_v33 = vsel %vm574_vm3, %v3593_v32, 0.0 }
 0x2ae   : > { %582 = vadd.xlane.f32.xlu0 %v581_v33 }
 0x33b   : > { %v583_v44 = vpop.xlane.xlu0 %582 }
 0x33c   : > { %3594 = vrcp.f32 %v583_v44 }
 0x346   : > { %v3595_v45 = vpop.eup %3594 }
 0x347   : > { %v585_v46 = vmul.f32 %v3595_v45, %v3593_v32 }
 0x349   : > { %v586_v47 = vpack.c.bf16 %v585_v46, %v585_v46 }
 0x34b   : > { %3238 = vmatmul.mubr.msk.bf16.vlgmr.msra.gmra.mrb[8].mxu0 %vm574_vm3, %v586_v47 }
 0x34c   : > { %3249 = vmatprep.mubr.msk.bf16.mxu0 %vm3757_vm0, %v3756_v0  ;;  %3248 = vmatpush3.bf16.xpose.msra.mxu0 %v696_v49  ;;  %v3032_v49 = vld [vmem:[%s4392_s5 + $0x2] ss:$0 sm:$0xff] }
 0x34d   : > { %3259 = vmatprep.subr.bf16.mxu0 %v3756_v0 }
 0x353   : > { %3250 = vmatmul.mubr.msk.bf16.vlgmr.msra.gmra.mrb[12].mxu0 %vm376_vm1, %v3947_v6 }
 0x354   : > { %3261 = vmatprep.mubr.msk.bf16.mxu0 %vm3757_vm0, %v3756_v0  ;;  %3260 = vmatpush3.bf16.xpose.msra.mxu0 %v802_v11 }
 0x355   : > { %3271 = vmatprep.subr.bf16.mxu0 %v3756_v0 }
 0x35b   : > { %3262 = vmatmul.mubr.msk.bf16.vlgmr.msra.gmra.mrb[16].mxu0 %vm376_vm1, %v3947_v6 }
 0x35c   : > { %3273 = vmatprep.mubr.msk.bf16.mxu0 %vm3757_vm0, %v3756_v0 }
 0x41e   : > { %v629_v51 = vpop.f32.mrb[8].mxu0 }
 0x41f   : > { %v635_v52 = vpack.c.bf16 %v629_v51, %v629_v51  ;;  %v3239_v53 = vpop.f32.mrb[9].mxu0 }
 0x420   : > { %v632_v55 = vpop.f32.mrb[10].mxu0 }
 0x421   : > { %v3240_v56 = vpop.f32.mrb[11].mxu0  ;;  %3244 = vmatmul.mubr.msk.bf16.vlgmr.msra.gmra.mrb[8].mxu1 %vm527_vm2, %v635_v52 }
 0x422   : > { %3254 = vmatpush3.bf16.xpose.msra.mxu1 %v749_v54  ;;  %3255 = vmatprep.mubr.msk.bf16.mxu1 %vm3757_vm0, %v3756_v0  ;;  %v3029_v54 = vld [vmem:[%s4391_s4 + $0x2] ss:$0 sm:$0xff] }
 0x423   : > { %3265 = vmatprep.subr.bf16.mxu1 %v3756_v0 }
 0x426   : > { %v732_v57 = vpop.f32.mrb[12].mxu0 }
 0x427   : > { %v3251_v58 = vpop.f32.mrb[13].mxu0  ;;  %v733_v8 = vadd.f32 %v3015_v3, %v732_v57 }
 0x428   : > { %v735_v59 = vpop.f32.mrb[14].mxu0 }
 0x429   : > { %3256 = vmatmul.mubr.msk.bf16.vlgmr.msra.gmra.mrb[12].mxu1 %vm376_vm1, %v3947_v6  ;;  %v3252_v60 = vpop.f32.mrb[15].mxu0  ;;  %v844_v9 = vpack.c.bf16 %v733_v8, %v733_v8 }
 0x42a   : > { %3267 = vmatprep.mubr.msk.bf16.mxu1 %vm3757_vm0, %v3756_v0  ;;  %v1108_v60 = vld [vmem:[#allocation5 + $0x4] sm:$0x3] }
 0x42e   : > { %v838_v22 = vpop.f32.mrb[16].mxu0 }
 0x42f   : > { %v3263_v23 = vpop.f32.mrb[17].mxu0  ;;  %v839_v27 = vadd.f32 %v3021_v25, %v838_v22 }
 0x430   : > { %v841_v24 = vpop.f32.mrb[18].mxu0 }
 0x431   : > { %v3264_v26 = vpop.f32.mrb[19].mxu0  ;;  %v904_v28 = vpack.c.bf16 %v839_v27, %v839_v27  ;;  %v3041_v24 = vld [vmem:[%s4388_s1 + $0x6] sm:$0x3] }
 0x432   : > { %v1328_v25 = vsel %vm376_vm1, %v3041_v24, 0  ;;  %v1371_v26 = vld [vmem:[#allocation2 + $0x6] sm:$0x3] }
 0x433   : > { %v909_v29 = vsel %vm591_vm4, %v904_v28, 0  ;;  %v1381_v30 = vsel %vm376_vm1, %v1371_v26, 0 }
 0x434   : > { %3272 = vmatpush3.bf16.msra.mxu0 %v909_v29 }
 0x435   : > { %3283 = vmatprep.subr.bf16.mxu0 %v3756_v0 }
 0x4fc   : > { %v785_v62 = vpop.f32.mrb[12].mxu1 }
 0x4fd   : > { %v786_v63 = vadd.f32 %v3018_v61, %v785_v62  ;;  %v3257_v1 = vpop.f32.mrb[13].mxu1  ;;  %v1118_v61 = vsel %vm376_vm1, %v1108_v60, 0 }
 0x4fe   : > { %v788_v2 = vpop.f32.mrb[14].mxu1 }
 0x4ff   : > { %v845_v4 = vpack.c.bf16 %v786_v63, %v786_v63  ;;  %v3258_v5 = vpop.f32.mrb[15].mxu1 }
 0x501   : > { %v850_v7 = vsel %vm527_vm2, %v845_v4, 0 }
 0x502   : > { %3266 = vmatpush3.bf16.xpose.msra.mxu1 %v850_v7 }
 0x503   : > { %3277 = vmatprep.subr.bf16.mxu1 %v3756_v0 }
 0x509   : > { %3268 = vmatmul.mubr.msk.bf16.vlgmr.msra.gmra.mrb[16].mxu1 %vm527_vm2, %v844_v9 }
 0x50a   : > { %3279 = vmatprep.mubr.msk.bf16.mxu1 %vm3757_vm0, %v3756_v0  ;;  %3278 = vmatpush3.bf16.msra.mxu1 %v958_v31 }
 0x50b   : > { %3289 = vmatprep.subr.bf16.mxu1 %v3756_v0 }
 0x5dc   : > { %v886_v12 = vpop.f32.mrb[16].mxu1 }
 0x5dd   : > { %v3269_v13 = vpop.f32.mrb[17].mxu1  ;;  %v892_v14 = vsel %vm574_vm3, %v886_v12, -inf }
 0x5de   : > { %893 = vmax.xlane.f32.xlu1 %v892_v14  ;;  %v889_v15 = vpop.f32.mrb[18].mxu1  ;;  %v3035_v13 = vld [vmem:[%s4393_s6 + $0x2] ss:$0 sm:$0xff] }
 0x5df   : > { %v3270_v16 = vpop.f32.mrb[19].mxu1 }
 0x66b   : > { %v894_v17 = vpop.xlane.xlu1 %893 }
 0x66c   : > { %v895_v18 = vsub.f32 %v886_v12, %v894_v17 }
 0x66e   : > { %v896_v19 = vmul.f32 1.442695, %v895_v18  ;;  %v3039_v18 = vld [vmem:[%s4394_s7 + $0x4] sm:$0x3] }
 0x670   : > { %3596 = vpow2.f32 %v896_v19  ;;  %v1274_v19 = vsel %vm640_vm5, %v3039_v18, 0 }
 0x67a   : > { %v3597_v20 = vpop.eup %3596 }
 0x67b   : > { %v898_v21 = vsel %vm574_vm3, %v3597_v20, 0.0 }
 0x67c   : > { %899 = vadd.xlane.f32.xlu1 %v898_v21 }
 0x709   : > { %v900_v32 = vpop.xlane.xlu1 %899 }
 0x70a   : > { %3598 = vrcp.f32 %v900_v32 }
 0x714   : > { %v3599_v33 = vpop.eup %3598 }
 0x715   : > { %v902_v34 = vmul.f32 %v3599_v33, %v3597_v20 }
 0x717   : > { %v903_v35 = vpack.c.bf16 %v902_v34, %v902_v34 }
 0x719   : > { %3274 = vmatmul.mubr.msk.bf16.vlgmr.msra.gmra.mrb[20].mxu0 %vm574_vm3, %v903_v35 }
 0x71a   : > { %3285 = vmatprep.mubr.msk.bf16.mxu0 %vm3757_vm0, %v3756_v0  ;;  %3284 = vmatpush3.bf16.xpose.msra.mxu0 %v1012_v37  ;;  %v3046_v37 = vld [vmem:[%s4392_s5 + $0x3] ss:$0 sm:$0xff] }
 0x71b   : > { %3295 = vmatprep.subr.bf16.mxu0 %v3756_v0 }
 0x721   : > { %3286 = vmatmul.mubr.msk.bf16.vlgmr.msra.gmra.mrb[24].mxu0 %vm376_vm1, %v3947_v6 }
 0x722   : > { %3297 = vmatprep.mubr.msk.bf16.mxu0 %vm3757_vm0, %v3756_v0  ;;  %3296 = vmatpush3.bf16.xpose.msra.mxu0 %v1118_v61 }
 0x723   : > { %3307 = vmatprep.subr.bf16.mxu0 %v3756_v0 }
 0x729   : > { %3298 = vmatmul.mubr.msk.bf16.vlgmr.msra.gmra.mrb[28].mxu0 %vm376_vm1, %v3947_v6 }
 0x72a   : > { %3309 = vmatprep.mubr.msk.bf16.mxu0 %vm3757_vm0, %v3756_v0 }
 0x7ec   : > { %v945_v39 = vpop.f32.mrb[20].mxu0 }
 0x7ed   : > { %v951_v40 = vpack.c.bf16 %v945_v39, %v945_v39  ;;  %v3275_v41 = vpop.f32.mrb[21].mxu0 }
 0x7ee   : > { %v948_v43 = vpop.f32.mrb[22].mxu0 }
 0x7ef   : > { %v3276_v44 = vpop.f32.mrb[23].mxu0  ;;  %3280 = vmatmul.mubr.msk.bf16.vlgmr.msra.gmra.mrb[8].mxu1 %vm527_vm2, %v951_v40 }
 0x7f0   : > { %3290 = vmatpush3.bf16.xpose.msra.mxu1 %v1065_v42  ;;  %3291 = vmatprep.mubr.msk.bf16.mxu1 %vm3757_vm0, %v3756_v0  ;;  %v3043_v42 = vld [vmem:[%s4391_s4 + $0x3] ss:$0 sm:$0xff] }
 0x7f1   : > { %3301 = vmatprep.subr.bf16.mxu1 %v3756_v0 }
 0x7f4   : > { %v1048_v45 = vpop.f32.mrb[24].mxu0 }
 0x7f5   : > { %v3287_v46 = vpop.f32.mrb[25].mxu0  ;;  %v1049_v58 = vadd.f32 %v3029_v54, %v1048_v45 }
 0x7f6   : > { %v1051_v47 = vpop.f32.mrb[26].mxu0 }
 0x7f7   : > { %3292 = vmatmul.mubr.msk.bf16.vlgmr.msra.gmra.mrb[20].mxu1 %vm376_vm1, %v3947_v6  ;;  %v3288_v48 = vpop.f32.mrb[27].mxu0  ;;  %v1160_v59 = vpack.c.bf16 %v1049_v58, %v1049_v58 }
 0x7f8   : > { %3303 = vmatprep.mubr.msk.bf16.mxu1 %vm3757_vm0, %v3756_v0  ;;  %v1424_v48 = vld [vmem:[#allocation5 + $0x6] sm:$0x3] }
 0x7fc   : > { %v1154_v10 = vpop.f32.mrb[28].mxu0 }
 0x7fd   : > { %v3299_v11 = vpop.f32.mrb[29].mxu0  ;;  %v1155_v15 = vadd.f32 %v3035_v13, %v1154_v10 }
 0x7fe   : > { %v1157_v12 = vpop.f32.mrb[30].mxu0 }
 0x7ff   : > { %v3300_v14 = vpop.f32.mrb[31].mxu0  ;;  %v1220_v16 = vpack.c.bf16 %v1155_v15, %v1155_v15  ;;  %v3055_v12 = vld [vmem:[%s4388_s1 + $0x8] sm:$0x3] }
 0x800   : > { %v1644_v13 = vsel %vm376_vm1, %v3055_v12, 0  ;;  %v1687_v14 = vld [vmem:[#allocation2 + $0x8] sm:$0x3] }
 0x801   : > { %v1225_v17 = vsel %vm591_vm4, %v1220_v16, 0  ;;  %v1697_v18 = vsel %vm376_vm1, %v1687_v14, 0 }
 0x802   : > { %3308 = vmatpush3.bf16.msra.mxu0 %v1225_v17 }
 0x803   : > { %3319 = vmatprep.subr.bf16.mxu0 %v3756_v0 }
 0x8ca   : > { %v1101_v50 = vpop.f32.mrb[20].mxu1 }
 0x8cb   : > { %v1102_v51 = vadd.f32 %v3032_v49, %v1101_v50  ;;  %v3293_v52 = vpop.f32.mrb[21].mxu1  ;;  %v1434_v49 = vsel %vm376_vm1, %v1424_v48, 0 }
 0x8cc   : > { %v1104_v53 = vpop.f32.mrb[22].mxu1 }
 0x8cd   : > { %v1161_v55 = vpack.c.bf16 %v1102_v51, %v1102_v51  ;;  %v3294_v56 = vpop.f32.mrb[23].mxu1 }
 0x8cf   : > { %v1166_v57 = vsel %vm527_vm2, %v1161_v55, 0 }
 0x8d0   : > { %3302 = vmatpush3.bf16.xpose.msra.mxu1 %v1166_v57 }
 0x8d1   : > { %3313 = vmatprep.subr.bf16.mxu1 %v3756_v0 }
 0x8d7   : > { %3304 = vmatmul.mubr.msk.bf16.vlgmr.msra.gmra.mrb[24].mxu1 %vm527_vm2, %v1160_v59 }
 0x8d8   : > { %3315 = vmatprep.mubr.msk.bf16.mxu1 %vm3757_vm0, %v3756_v0  ;;  %3314 = vmatpush3.bf16.msra.mxu1 %v1274_v19 }
 0x8d9   : > { %3325 = vmatprep.subr.bf16.mxu1 %v3756_v0 }
 0x9aa   : > { %v1202_v62 = vpop.f32.mrb[24].mxu1 }
 0x9ab   : > { %v3305_v63 = vpop.f32.mrb[25].mxu1  ;;  %v1208_v1 = vsel %vm574_vm3, %v1202_v62, -inf }
 0x9ac   : > { %1209 = vmax.xlane.f32.xlu0 %v1208_v1  ;;  %v1205_v2 = vpop.f32.mrb[26].mxu1  ;;  %v3049_v63 = vld [vmem:[%s4393_s6 + $0x3] ss:$0 sm:$0xff] }
 0x9ad   : > { %v3306_v3 = vpop.f32.mrb[27].mxu1 }
 0xa39   : > { %v1210_v4 = vpop.xlane.xlu0 %1209 }
 0xa3a   : > { %v1211_v5 = vsub.f32 %v1202_v62, %v1210_v4 }
 0xa3c   : > { %v1212_v7 = vmul.f32 1.442695, %v1211_v5  ;;  %v3053_v5 = vld [vmem:[%s4394_s7 + $0x6] sm:$0x3] }
 0xa3e   : > { %3600 = vpow2.f32 %v1212_v7  ;;  %v1590_v7 = vsel %vm640_vm5, %v3053_v5, 0 }
 0xa48   : > { %v3601_v8 = vpop.eup %3600 }
 0xa49   : > { %v1214_v9 = vsel %vm574_vm3, %v3601_v8, 0.0 }
 0xa4a   : > { %1215 = vadd.xlane.f32.xlu1 %v1214_v9 }
 0xad7   : > { %v1216_v20 = vpop.xlane.xlu1 %1215 }
 0xad8   : > { %3602 = vrcp.f32 %v1216_v20 }
 0xae2   : > { %v3603_v21 = vpop.eup %3602 }
 0xae3   : > { %v1218_v22 = vmul.f32 %v3603_v21, %v3601_v8 }
 0xae5   : > { %v1219_v23 = vpack.c.bf16 %v1218_v22, %v1218_v22 }
 0xae7   : > { %3310 = vmatmul.mubr.msk.bf16.vlgmr.msra.gmra.mrb[32].mxu0 %vm574_vm3, %v1219_v23 }
 0xae8   : > { %3321 = vmatprep.mubr.msk.bf16.mxu0 %vm3757_vm0, %v3756_v0  ;;  %3320 = vmatpush3.bf16.xpose.msra.mxu0 %v1328_v25  ;;  %v3060_v25 = vld [vmem:[%s4392_s5 + $0x4] ss:$0 sm:$0xff] }
 0xae9   : > { %3331 = vmatprep.subr.bf16.mxu0 %v3756_v0 }
 0xaef   : > { %3322 = vmatmul.mubr.msk.bf16.vlgmr.msra.gmra.mrb[36].mxu0 %vm376_vm1, %v3947_v6 }
 0xaf0   : > { %3333 = vmatprep.mubr.msk.bf16.mxu0 %vm3757_vm0, %v3756_v0  ;;  %3332 = vmatpush3.bf16.xpose.msra.mxu0 %v1434_v49 }
 0xaf1   : > { %3343 = vmatprep.subr.bf16.mxu0 %v3756_v0 }
 0xaf7   : > { %3334 = vmatmul.mubr.msk.bf16.vlgmr.msra.gmra.mrb[40].mxu0 %vm376_vm1, %v3947_v6 }
 0xaf8   : > { %3345 = vmatprep.mubr.msk.bf16.mxu0 %vm3757_vm0, %v3756_v0 }
 0xbba   : > { %v1261_v27 = vpop.f32.mrb[32].mxu0 }
 0xbbb   : > { %v1267_v28 = vpack.c.bf16 %v1261_v27, %v1261_v27  ;;  %v3311_v29 = vpop.f32.mrb[33].mxu0 }
 0xbbc   : > { %v1264_v31 = vpop.f32.mrb[34].mxu0 }
 0xbbd   : > { %v3312_v32 = vpop.f32.mrb[35].mxu0  ;;  %3316 = vmatmul.mubr.msk.bf16.vlgmr.msra.gmra.mrb[8].mxu1 %vm527_vm2, %v1267_v28 }
 0xbbe   : > { %3326 = vmatpush3.bf16.xpose.msra.mxu1 %v1381_v30  ;;  %3327 = vmatprep.mubr.msk.bf16.mxu1 %vm3757_vm0, %v3756_v0  ;;  %v3057_v30 = vld [vmem:[%s4391_s4 + $0x4] ss:$0 sm:$0xff] }
 0xbbf   : > { %3337 = vmatprep.subr.bf16.mxu1 %v3756_v0 }
 0xbc2   : > { %v1364_v33 = vpop.f32.mrb[36].mxu0 }
 0xbc3   : > { %v3323_v34 = vpop.f32.mrb[37].mxu0  ;;  %v1365_v46 = vadd.f32 %v3043_v42, %v1364_v33 }
 0xbc4   : > { %v1367_v35 = vpop.f32.mrb[38].mxu0 }
 0xbc5   : > { %3328 = vmatmul.mubr.msk.bf16.vlgmr.msra.gmra.mrb[28].mxu1 %vm376_vm1, %v3947_v6  ;;  %v3324_v36 = vpop.f32.mrb[39].mxu0  ;;  %v1476_v47 = vpack.c.bf16 %v1365_v46, %v1365_v46 }
 0xbc6   : > { %3339 = vmatprep.mubr.msk.bf16.mxu1 %vm3757_vm0, %v3756_v0  ;;  %v1740_v36 = vld [vmem:[#allocation5 + $0x8] sm:$0x3] }
 0xbca   : > { %v1470_v60 = vpop.f32.mrb[40].mxu0 }
 0xbcb   : > { %v3335_v61 = vpop.f32.mrb[41].mxu0  ;;  %v1471_v2 = vadd.f32 %v3049_v63, %v1470_v60 }
 0xbcc   : > { %v1473_v62 = vpop.f32.mrb[42].mxu0 }
 0xbcd   : > { %v3336_v1 = vpop.f32.mrb[43].mxu0  ;;  %v1536_v3 = vpack.c.bf16 %v1471_v2, %v1471_v2  ;;  %v3069_v62 = vld [vmem:[%s4388_s1 + $0xa] sm:$0x3] }
 0xbce   : > { %v1960_v63 = vsel %vm376_vm1, %v3069_v62, 0  ;;  %v2003_v1 = vld [vmem:[#allocation2 + $0xa] sm:$0x3] }
 0xbcf   : > { %v1541_v4 = vsel %vm591_vm4, %v1536_v3, 0  ;;  %v2013_v5 = vsel %vm376_vm1, %v2003_v1, 0 }
 0xbd0   : > { %3344 = vmatpush3.bf16.msra.mxu0 %v1541_v4 }
 0xbd1   : > { %3355 = vmatprep.subr.bf16.mxu0 %v3756_v0 }
 0xc98   : > { %v1417_v38 = vpop.f32.mrb[28].mxu1 }
 0xc99   : > { %v1418_v39 = vadd.f32 %v3046_v37, %v1417_v38  ;;  %v3329_v40 = vpop.f32.mrb[29].mxu1  ;;  %v1750_v37 = vsel %vm376_vm1, %v1740_v36, 0 }
 0xc9a   : > { %v1420_v41 = vpop.f32.mrb[30].mxu1 }
 0xc9b   : > { %v1477_v43 = vpack.c.bf16 %v1418_v39, %v1418_v39  ;;  %v3330_v44 = vpop.f32.mrb[31].mxu1 }
 0xc9d   : > { %v1482_v45 = vsel %vm527_vm2, %v1477_v43, 0 }
 0xc9e   : > { %3338 = vmatpush3.bf16.xpose.msra.mxu1 %v1482_v45 }
 0xc9f   : > { %3349 = vmatprep.subr.bf16.mxu1 %v3756_v0 }
 0xca5   : > { %3340 = vmatmul.mubr.msk.bf16.vlgmr.msra.gmra.mrb[32].mxu1 %vm527_vm2, %v1476_v47 }
 0xca6   : > { %3351 = vmatprep.mubr.msk.bf16.mxu1 %vm3757_vm0, %v3756_v0  ;;  %3350 = vmatpush3.bf16.msra.mxu1 %v1590_v7 }
 0xca7   : > { %3361 = vmatprep.subr.bf16.mxu1 %v3756_v0 }
 0xd78   : > { %v1518_v50 = vpop.f32.mrb[32].mxu1 }
 0xd79   : > { %v3341_v51 = vpop.f32.mrb[33].mxu1  ;;  %v1524_v52 = vsel %vm574_vm3, %v1518_v50, -inf }
 0xd7a   : > { %1525 = vmax.xlane.f32.xlu0 %v1524_v52  ;;  %v1521_v53 = vpop.f32.mrb[34].mxu1  ;;  %v3063_v51 = vld [vmem:[%s4393_s6 + $0x4] ss:$0 sm:$0xff] }
 0xd7b   : > { %v3342_v54 = vpop.f32.mrb[35].mxu1 }
 0xe07   : > { %v1526_v55 = vpop.xlane.xlu0 %1525 }
 0xe08   : > { %v1527_v56 = vsub.f32 %v1518_v50, %v1526_v55 }
 0xe0a   : > { %v1528_v57 = vmul.f32 1.442695, %v1527_v56  ;;  %v3067_v56 = vld [vmem:[%s4394_s7 + $0x8] sm:$0x3] }
 0xe0c   : > { %3604 = vpow2.f32 %v1528_v57  ;;  %v1906_v57 = vsel %vm640_vm5, %v3067_v56, 0 }
 0xe16   : > { %v3605_v58 = vpop.eup %3604 }
 0xe17   : > { %v1530_v59 = vsel %vm574_vm3, %v3605_v58, 0.0 }
 0xe18   : > { %1531 = vadd.xlane.f32.xlu1 %v1530_v59 }
 0xea5   : > { %v1532_v8 = vpop.xlane.xlu1 %1531 }
 0xea6   : > { %3606 = vrcp.f32 %v1532_v8 }
 0xeb0   : > { %v3607_v9 = vpop.eup %3606 }
 0xeb1   : > { %v1534_v10 = vmul.f32 %v3607_v9, %v3605_v58 }
 0xeb3   : > { %v1535_v11 = vpack.c.bf16 %v1534_v10, %v1534_v10 }
 0xeb5   : > { %3346 = vmatmul.mubr.msk.bf16.vlgmr.msra.gmra.mrb[44].mxu0 %vm574_vm3, %v1535_v11 }
 0xeb6   : > { %3357 = vmatprep.mubr.msk.bf16.mxu0 %vm3757_vm0, %v3756_v0  ;;  %3356 = vmatpush3.bf16.xpose.msra.mxu0 %v1644_v13  ;;  %v3074_v13 = vld [vmem:[%s4392_s5 + $0x5] ss:$0 sm:$0xff] }
 0xeb7   : > { %3367 = vmatprep.subr.bf16.mxu0 %v3756_v0 }
 0xebd   : > { %3358 = vmatmul.mubr.msk.bf16.vlgmr.msra.gmra.mrb[48].mxu0 %vm376_vm1, %v3947_v6 }
 0xebe   : > { %3369 = vmatprep.mubr.msk.bf16.mxu0 %vm3757_vm0, %v3756_v0  ;;  %3368 = vmatpush3.bf16.xpose.msra.mxu0 %v1750_v37 }
 0xebf   : > { %3379 = vmatprep.subr.bf16.mxu0 %v3756_v0 }
 0xec5   : > { %3370 = vmatmul.mubr.msk.bf16.vlgmr.msra.gmra.mrb[52].mxu0 %vm376_vm1, %v3947_v6 }
 0xec6   : > { %3381 = vmatprep.mubr.msk.bf16.mxu0 %vm3757_vm0, %v3756_v0 }
 0xf88   : > { %v1577_v15 = vpop.f32.mrb[44].mxu0 }
 0xf89   : > { %v1583_v16 = vpack.c.bf16 %v1577_v15, %v1577_v15  ;;  %v3347_v17 = vpop.f32.mrb[45].mxu0 }
 0xf8a   : > { %v1580_v19 = vpop.f32.mrb[46].mxu0 }
 0xf8b   : > { %v3348_v20 = vpop.f32.mrb[47].mxu0  ;;  %3352 = vmatmul.mubr.msk.bf16.vlgmr.msra.gmra.mrb[8].mxu1 %vm527_vm2, %v1583_v16 }
 0xf8c   : > { %3362 = vmatpush3.bf16.xpose.msra.mxu1 %v1697_v18  ;;  %3363 = vmatprep.mubr.msk.bf16.mxu1 %vm3757_vm0, %v3756_v0  ;;  %v3071_v18 = vld [vmem:[%s4391_s4 + $0x5] ss:$0 sm:$0xff] }
 0xf8d   : > { %3373 = vmatprep.subr.bf16.mxu1 %v3756_v0 }
 0xf90   : > { %v1680_v21 = vpop.f32.mrb[48].mxu0 }
 0xf91   : > { %v3359_v22 = vpop.f32.mrb[49].mxu0  ;;  %v1681_v34 = vadd.f32 %v3057_v30, %v1680_v21 }
 0xf92   : > { %v1683_v23 = vpop.f32.mrb[50].mxu0 }
 0xf93   : > { %3364 = vmatmul.mubr.msk.bf16.vlgmr.msra.gmra.mrb[36].mxu1 %vm376_vm1, %v3947_v6  ;;  %v3360_v24 = vpop.f32.mrb[51].mxu0  ;;  %v1792_v35 = vpack.c.bf16 %v1681_v34, %v1681_v34 }
 0xf94   : > { %3375 = vmatprep.mubr.msk.bf16.mxu1 %vm3757_vm0, %v3756_v0  ;;  %v2056_v24 = vld [vmem:[#allocation5 + $0xa] sm:$0x3] }
 0xf98   : > { %v1786_v48 = vpop.f32.mrb[52].mxu0 }
 0xf99   : > { %v3371_v49 = vpop.f32.mrb[53].mxu0  ;;  %v1787_v53 = vadd.f32 %v3063_v51, %v1786_v48 }
 0xf9a   : > { %v1789_v50 = vpop.f32.mrb[54].mxu0 }
 0xf9b   : > { %v3372_v52 = vpop.f32.mrb[55].mxu0  ;;  %v1852_v54 = vpack.c.bf16 %v1787_v53, %v1787_v53  ;;  %v3083_v50 = vld [vmem:[%s4388_s1 + $0xc] sm:$0x3] }
 0xf9c   : > { %v2276_v51 = vsel %vm376_vm1, %v3083_v50, 0  ;;  %v2319_v52 = vld [vmem:[#allocation2 + $0xc] sm:$0x3] }
 0xf9d   : > { %v1857_v55 = vsel %vm591_vm4, %v1852_v54, 0  ;;  %v2329_v56 = vsel %vm376_vm1, %v2319_v52, 0 }
 0xf9e   : > { %3380 = vmatpush3.bf16.msra.mxu0 %v1857_v55 }
 0xf9f   : > { %3391 = vmatprep.subr.bf16.mxu0 %v3756_v0 }
0x1066   : > { %v1733_v26 = vpop.f32.mrb[36].mxu1 }
0x1067   : > { %v1734_v27 = vadd.f32 %v3060_v25, %v1733_v26  ;;  %v3365_v28 = vpop.f32.mrb[37].mxu1  ;;  %v2066_v25 = vsel %vm376_vm1, %v2056_v24, 0 }
0x1068   : > { %v1736_v29 = vpop.f32.mrb[38].mxu1 }
0x1069   : > { %v1793_v31 = vpack.c.bf16 %v1734_v27, %v1734_v27  ;;  %v3366_v32 = vpop.f32.mrb[39].mxu1 }
0x106b   : > { %v1798_v33 = vsel %vm527_vm2, %v1793_v31, 0 }
0x106c   : > { %3374 = vmatpush3.bf16.xpose.msra.mxu1 %v1798_v33 }
0x106d   : > { %3385 = vmatprep.subr.bf16.mxu1 %v3756_v0 }
0x1073   : > { %3376 = vmatmul.mubr.msk.bf16.vlgmr.msra.gmra.mrb[40].mxu1 %vm527_vm2, %v1792_v35 }
0x1074   : > { %3387 = vmatprep.mubr.msk.bf16.mxu1 %vm3757_vm0, %v3756_v0  ;;  %3386 = vmatpush3.bf16.msra.mxu1 %v1906_v57 }
0x1075   : > { %3397 = vmatprep.subr.bf16.mxu1 %v3756_v0 }
0x1146   : > { %v1834_v38 = vpop.f32.mrb[40].mxu1 }
0x1147   : > { %v3377_v39 = vpop.f32.mrb[41].mxu1  ;;  %v1840_v40 = vsel %vm574_vm3, %v1834_v38, -inf }
0x1148   : > { %1841 = vmax.xlane.f32.xlu0 %v1840_v40  ;;  %v1837_v41 = vpop.f32.mrb[42].mxu1  ;;  %v3077_v39 = vld [vmem:[%s4393_s6 + $0x5] ss:$0 sm:$0xff] }
0x1149   : > { %v3378_v42 = vpop.f32.mrb[43].mxu1 }
0x11d5   : > { %v1842_v43 = vpop.xlane.xlu0 %1841 }
0x11d6   : > { %v1843_v44 = vsub.f32 %v1834_v38, %v1842_v43 }
0x11d8   : > { %v1844_v45 = vmul.f32 1.442695, %v1843_v44  ;;  %v3081_v44 = vld [vmem:[%s4394_s7 + $0xa] sm:$0x3] }
0x11da   : > { %3608 = vpow2.f32 %v1844_v45  ;;  %v2222_v45 = vsel %vm640_vm5, %v3081_v44, 0 }
0x11e4   : > { %v3609_v46 = vpop.eup %3608 }
0x11e5   : > { %v1846_v47 = vsel %vm574_vm3, %v3609_v46, 0.0 }
0x11e6   : > { %1847 = vadd.xlane.f32.xlu1 %v1846_v47 }
0x1273   : > { %v1848_v58 = vpop.xlane.xlu1 %1847 }
0x1274   : > { %3610 = vrcp.f32 %v1848_v58 }
0x127e   : > { %v3611_v59 = vpop.eup %3610 }
0x127f   : > { %v1850_v60 = vmul.f32 %v3611_v59, %v3609_v46 }
0x1281   : > { %v1851_v61 = vpack.c.bf16 %v1850_v60, %v1850_v60 }
0x1283   : > { %3382 = vmatmul.mubr.msk.bf16.vlgmr.msra.gmra.mrb[56].mxu0 %vm574_vm3, %v1851_v61 }
0x1284   : > { %3393 = vmatprep.mubr.msk.bf16.mxu0 %vm3757_vm0, %v3756_v0  ;;  %3392 = vmatpush3.bf16.xpose.msra.mxu0 %v1960_v63  ;;  %v3088_v63 = vld [vmem:[%s4392_s5 + $0x6] ss:$0 sm:$0xff] }
0x1285   : > { %3403 = vmatprep.subr.bf16.mxu0 %v3756_v0 }
0x128b   : > { %3394 = vmatmul.mubr.msk.bf16.vlgmr.msra.gmra.mrb[60].mxu0 %vm376_vm1, %v3947_v6 }
0x128c   : > { %3405 = vmatprep.mubr.msk.bf16.mxu0 %vm3757_vm0, %v3756_v0  ;;  %3404 = vmatpush3.bf16.xpose.msra.mxu0 %v2066_v25 }
0x128d   : > { %3415 = vmatprep.subr.bf16.mxu0 %v3756_v0 }
0x1293   : > { %3406 = vmatmul.mubr.msk.bf16.vlgmr.msra.gmra.mrb[64].mxu0 %vm376_vm1, %v3947_v6 }
0x1294   : > { %3417 = vmatprep.mubr.msk.bf16.mxu0 %vm3757_vm0, %v3756_v0 }
0x1356   : > { %v1893_v2 = vpop.f32.mrb[56].mxu0 }
0x1357   : > { %v1899_v3 = vpack.c.bf16 %v1893_v2, %v1893_v2  ;;  %v3383_v4 = vpop.f32.mrb[57].mxu0 }
0x1358   : > { %v1896_v7 = vpop.f32.mrb[58].mxu0 }
0x1359   : > { %v3384_v8 = vpop.f32.mrb[59].mxu0  ;;  %3388 = vmatmul.mubr.msk.bf16.vlgmr.msra.gmra.mrb[8].mxu1 %vm527_vm2, %v1899_v3 }
0x135a   : > { %3398 = vmatpush3.bf16.xpose.msra.mxu1 %v2013_v5  ;;  %3399 = vmatprep.mubr.msk.bf16.mxu1 %vm3757_vm0, %v3756_v0  ;;  %v3085_v5 = vld [vmem:[%s4391_s4 + $0x6] ss:$0 sm:$0xff] }
0x135b   : > { %3409 = vmatprep.subr.bf16.mxu1 %v3756_v0 }
0x135e   : > { %v1996_v9 = vpop.f32.mrb[60].mxu0 }
0x135f   : > { %v3395_v10 = vpop.f32.mrb[61].mxu0  ;;  %v1997_v22 = vadd.f32 %v3071_v18, %v1996_v9 }
0x1360   : > { %v1999_v11 = vpop.f32.mrb[62].mxu0 }
0x1361   : > { %3400 = vmatmul.mubr.msk.bf16.vlgmr.msra.gmra.mrb[44].mxu1 %vm376_vm1, %v3947_v6  ;;  %v3396_v12 = vpop.f32.mrb[63].mxu0  ;;  %v2108_v23 = vpack.c.bf16 %v1997_v22, %v1997_v22 }
0x1362   : > { %3411 = vmatprep.mubr.msk.bf16.mxu1 %vm3757_vm0, %v3756_v0  ;;  %v2372_v12 = vld [vmem:[#allocation5 + $0xc] sm:$0x3] }
0x1366   : > { %v2102_v36 = vpop.f32.mrb[64].mxu0 }
0x1367   : > { %v3407_v37 = vpop.f32.mrb[65].mxu0  ;;  %v2103_v41 = vadd.f32 %v3077_v39, %v2102_v36 }
0x1368   : > { %v2105_v38 = vpop.f32.mrb[66].mxu0 }
0x1369   : > { %v3408_v40 = vpop.f32.mrb[67].mxu0  ;;  %v2168_v42 = vpack.c.bf16 %v2103_v41, %v2103_v41  ;;  %v3097_v38 = vld [vmem:[%s4388_s1 + $0xe] sm:$0x3] }
0x136a   : > { %v2592_v39 = vsel %vm376_vm1, %v3097_v38, 0  ;;  %v2635_v40 = vld [vmem:[#allocation2 + $0xe] sm:$0x3] }
0x136b   : > { %v2173_v43 = vsel %vm591_vm4, %v2168_v42, 0  ;;  %v2645_v44 = vsel %vm376_vm1, %v2635_v40, 0 }
0x136c   : > { %3416 = vmatpush3.bf16.msra.mxu0 %v2173_v43 }
0x136d   : > { %3427 = vmatprep.subr.bf16.mxu0 %v3756_v0 }
0x1434   : > { %v2049_v14 = vpop.f32.mrb[44].mxu1 }
0x1435   : > { %v2050_v15 = vadd.f32 %v3074_v13, %v2049_v14  ;;  %v3401_v16 = vpop.f32.mrb[45].mxu1  ;;  %v2382_v13 = vsel %vm376_vm1, %v2372_v12, 0 }
0x1436   : > { %v2052_v17 = vpop.f32.mrb[46].mxu1 }
0x1437   : > { %v2109_v19 = vpack.c.bf16 %v2050_v15, %v2050_v15  ;;  %v3402_v20 = vpop.f32.mrb[47].mxu1 }
0x1439   : > { %v2114_v21 = vsel %vm527_vm2, %v2109_v19, 0 }
0x143a   : > { %3410 = vmatpush3.bf16.xpose.msra.mxu1 %v2114_v21 }
0x143b   : > { %3421 = vmatprep.subr.bf16.mxu1 %v3756_v0 }
0x1441   : > { %3412 = vmatmul.mubr.msk.bf16.vlgmr.msra.gmra.mrb[48].mxu1 %vm527_vm2, %v2108_v23 }
0x1442   : > { %3423 = vmatprep.mubr.msk.bf16.mxu1 %vm3757_vm0, %v3756_v0  ;;  %3422 = vmatpush3.bf16.msra.mxu1 %v2222_v45 }
0x1443   : > { %3433 = vmatprep.subr.bf16.mxu1 %v3756_v0 }
0x1514   : > { %v2150_v26 = vpop.f32.mrb[48].mxu1 }
0x1515   : > { %v3413_v27 = vpop.f32.mrb[49].mxu1  ;;  %v2156_v28 = vsel %vm574_vm3, %v2150_v26, -inf }
0x1516   : > { %2157 = vmax.xlane.f32.xlu0 %v2156_v28  ;;  %v2153_v29 = vpop.f32.mrb[50].mxu1  ;;  %v3091_v27 = vld [vmem:[%s4393_s6 + $0x6] ss:$0 sm:$0xff] }
0x1517   : > { %v3414_v30 = vpop.f32.mrb[51].mxu1 }
0x15a3   : > { %v2158_v31 = vpop.xlane.xlu0 %2157 }
0x15a4   : > { %v2159_v32 = vsub.f32 %v2150_v26, %v2158_v31 }
0x15a6   : > { %v2160_v33 = vmul.f32 1.442695, %v2159_v32  ;;  %v3095_v32 = vld [vmem:[%s4394_s7 + $0xc] sm:$0x3] }
0x15a8   : > { %3612 = vpow2.f32 %v2160_v33  ;;  %v2538_v33 = vsel %vm640_vm5, %v3095_v32, 0 }
0x15b2   : > { %v3613_v34 = vpop.eup %3612 }
0x15b3   : > { %v2162_v35 = vsel %vm574_vm3, %v3613_v34, 0.0 }
0x15b4   : > { %2163 = vadd.xlane.f32.xlu1 %v2162_v35 }
0x1641   : > { %v2164_v46 = vpop.xlane.xlu1 %2163 }
0x1642   : > { %3614 = vrcp.f32 %v2164_v46 }
0x164c   : > { %v3615_v47 = vpop.eup %3614 }
0x164d   : > { %v2166_v48 = vmul.f32 %v3615_v47, %v3613_v34 }
0x164f   : > { %v2167_v49 = vpack.c.bf16 %v2166_v48, %v2166_v48 }
0x1651   : > { %3418 = vmatmul.mubr.msk.bf16.vlgmr.msra.gmra.mrb[68].mxu0 %vm574_vm3, %v2167_v49 }
0x1652   : > { %3429 = vmatprep.mubr.msk.bf16.mxu0 %vm3757_vm0, %v3756_v0  ;;  %3428 = vmatpush3.bf16.xpose.msra.mxu0 %v2276_v51  ;;  %v3102_v51 = vld [vmem:[%s4392_s5 + $0x7] ss:$0 sm:$0xff] }
0x1653   : > { %3439 = vmatprep.subr.bf16.mxu0 %v3756_v0 }
0x1659   : > { %3430 = vmatmul.mubr.msk.bf16.vlgmr.msra.gmra.mrb[72].mxu0 %vm376_vm1, %v3947_v6 }
0x165a   : > { %3441 = vmatprep.mubr.msk.bf16.mxu0 %vm3757_vm0, %v3756_v0  ;;  %3440 = vmatpush3.bf16.xpose.msra.mxu0 %v2382_v13 }
0x165b   : > { %3451 = vmatprep.subr.bf16.mxu0 %v3756_v0 }
0x1661   : > { %3442 = vmatmul.mubr.msk.bf16.vlgmr.msra.gmra.mrb[76].mxu0 %vm376_vm1, %v3947_v6 }
0x1662   : > { %3453 = vmatprep.mubr.msk.bf16.mxu0 %vm3757_vm0, %v3756_v0 }
0x1724   : > { %v2209_v53 = vpop.f32.mrb[68].mxu0 }
0x1725   : > { %v2215_v54 = vpack.c.bf16 %v2209_v53, %v2209_v53  ;;  %v3419_v55 = vpop.f32.mrb[69].mxu0 }
0x1726   : > { %v2212_v57 = vpop.f32.mrb[70].mxu0 }
0x1727   : > { %v3420_v58 = vpop.f32.mrb[71].mxu0  ;;  %3424 = vmatmul.mubr.msk.bf16.vlgmr.msra.gmra.mrb[8].mxu1 %vm527_vm2, %v2215_v54 }
0x1728   : > { %3434 = vmatpush3.bf16.xpose.msra.mxu1 %v2329_v56  ;;  %3435 = vmatprep.mubr.msk.bf16.mxu1 %vm3757_vm0, %v3756_v0  ;;  %v3099_v56 = vld [vmem:[%s4391_s4 + $0x7] ss:$0 sm:$0xff] }
0x1729   : > { %3445 = vmatprep.subr.bf16.mxu1 %v3756_v0 }
0x172c   : > { %v2312_v59 = vpop.f32.mrb[72].mxu0 }
0x172d   : > { %v3431_v60 = vpop.f32.mrb[73].mxu0  ;;  %v2313_v10 = vadd.f32 %v3085_v5, %v2312_v59 }
0x172e   : > { %v2315_v61 = vpop.f32.mrb[74].mxu0 }
0x172f   : > { %3436 = vmatmul.mubr.msk.bf16.vlgmr.msra.gmra.mrb[52].mxu1 %vm376_vm1, %v3947_v6  ;;  %v3432_v62 = vpop.f32.mrb[75].mxu0  ;;  %v2424_v11 = vpack.c.bf16 %v2313_v10, %v2313_v10 }
0x1730   : > { %3447 = vmatprep.mubr.msk.bf16.mxu1 %vm3757_vm0, %v3756_v0  ;;  %v2688_v62 = vld [vmem:[#allocation5 + $0xe] sm:$0x3] }
0x1734   : > { %v2418_v24 = vpop.f32.mrb[76].mxu0 }
0x1735   : > { %v3443_v25 = vpop.f32.mrb[77].mxu0  ;;  %v2419_v29 = vadd.f32 %v3091_v27, %v2418_v24 }
0x1736   : > { %v2421_v26 = vpop.f32.mrb[78].mxu0 }
0x1737   : > { %v3444_v28 = vpop.f32.mrb[79].mxu0  ;;  %v2484_v30 = vpack.c.bf16 %v2419_v29, %v2419_v29  ;;  %v3003_v29 = vld [vmem:[%s4395_s8] ss:$0 sm:$0xff] }
0x1739   : > { %v2489_v31 = vsel %vm591_vm4, %v2484_v30, 0 }
0x173a   : > { %3452 = vmatpush3.bf16.msra.mxu0 %v2489_v31 }
0x173b   : > { %3463 = vmatprep.subr.bf16.mxu0 %v3756_v0 }
0x1802   : > { %v2365_v1 = vpop.f32.mrb[52].mxu1 }
0x1803   : > { %v2366_v2 = vadd.f32 %v3088_v63, %v2365_v1  ;;  %v3437_v3 = vpop.f32.mrb[53].mxu1  ;;  %v2698_v63 = vsel %vm376_vm1, %v2688_v62, 0 }
0x1804   : > { %v2368_v4 = vpop.f32.mrb[54].mxu1 }
0x1805   : > { %v2425_v7 = vpack.c.bf16 %v2366_v2, %v2366_v2  ;;  %v3438_v8 = vpop.f32.mrb[55].mxu1 }
0x1807   : > { %v2430_v9 = vsel %vm527_vm2, %v2425_v7, 0 }
0x1808   : > { %3446 = vmatpush3.bf16.xpose.msra.mxu1 %v2430_v9 }
0x1809   : > { %3457 = vmatprep.subr.bf16.mxu1 %v3756_v0 }
0x180f   : > { %3448 = vmatmul.mubr.msk.bf16.vlgmr.msra.gmra.mrb[56].mxu1 %vm527_vm2, %v2424_v11 }
0x1810   : > { %3459 = vmatprep.mubr.msk.bf16.mxu1 %vm3757_vm0, %v3756_v0  ;;  %3458 = vmatpush3.bf16.msra.mxu1 %v2538_v33 }
0x1811   : > { %3469 = vmatprep.subr.bf16.mxu1 %v3756_v0 }
0x18e2   : > { %v2466_v14 = vpop.f32.mrb[56].mxu1 }
0x18e3   : > { %v3449_v15 = vpop.f32.mrb[57].mxu1  ;;  %v2472_v16 = vsel %vm574_vm3, %v2466_v14, -inf }
0x18e4   : > { %2473 = vmax.xlane.f32.xlu0 %v2472_v16  ;;  %v2469_v17 = vpop.f32.mrb[58].mxu1 }
0x18e5   : > { %v3450_v18 = vpop.f32.mrb[59].mxu1 }
0x18e6   : > { %v3109_v18 = vld [vmem:[%s4394_s7 + $0xe] sm:$0x3] }
0x1971   : > { %v2474_v19 = vpop.xlane.xlu0 %2473 }
0x1972   : > { %v2475_v20 = vsub.f32 %v2466_v14, %v2474_v19  ;;  %v2854_v19 = vsel %vm640_vm5, %v3109_v18, 0 }
0x1974   : > { %v2476_v21 = vmul.f32 1.442695, %v2475_v20 }
0x1976   : > { %3616 = vpow2.f32 %v2476_v21 }
0x1980   : > { %v3617_v22 = vpop.eup %3616 }
0x1981   : > { %v2478_v23 = vsel %vm574_vm3, %v3617_v22, 0.0 }
0x1982   : > { %2479 = vadd.xlane.f32.xlu1 %v2478_v23 }
0x1a0f   : > { %v2480_v34 = vpop.xlane.xlu1 %2479 }
0x1a10   : > { %3618 = vrcp.f32 %v2480_v34 }
0x1a1a   : > { %v3619_v35 = vpop.eup %3618 }
0x1a1b   : > { %v2482_v36 = vmul.f32 %v3619_v35, %v3617_v22 }
0x1a1d   : > { %v2483_v37 = vpack.c.bf16 %v2482_v36, %v2482_v36 }
0x1a1f   : > { %3454 = vmatmul.mubr.msk.bf16.vlgmr.msra.gmra.mrb[80].mxu0 %vm574_vm3, %v2483_v37 }
0x1a20   : > { %3465 = vmatprep.mubr.msk.bf16.mxu0 %vm3757_vm0, %v3756_v0  ;;  %3464 = vmatpush3.bf16.xpose.msra.mxu0 %v2592_v39 }
0x1a21   : > { %3475 = vmatprep.subr.bf16.mxu0 %v3756_v0 }
0x1a27   : > { %3466 = vmatmul.mubr.msk.bf16.vlgmr.msra.gmra.mrb[84].mxu0 %vm376_vm1, %v3947_v6 }
0x1a28   : > { %3477 = vmatprep.mubr.msk.bf16.mxu0 %vm3757_vm0, %v3756_v0  ;;  %3476 = vmatpush3.bf16.xpose.msra.mxu0 %v2698_v63 }
0x1a29   : > { %3487 = vmatprep.subr.bf16.mxu0 %v3756_v0 }
0x1a2f   : > { %3478 = vmatmul.mubr.msk.bf16.vlgmr.msra.gmra.mrb[88].mxu0 %vm376_vm1, %v3947_v6 }
0x1a30   : > { %3489 = vmatprep.mubr.msk.bf16.mxu0 %vm3757_vm0, %v3756_v0 }
0x1af2   : > { %v2525_v41 = vpop.f32.mrb[80].mxu0 }
0x1af3   : > { %v2531_v42 = vpack.c.bf16 %v2525_v41, %v2525_v41  ;;  %v3455_v43 = vpop.f32.mrb[81].mxu0 }
0x1af4   : > { %v2528_v45 = vpop.f32.mrb[82].mxu0 }
0x1af5   : > { %v3456_v46 = vpop.f32.mrb[83].mxu0  ;;  %3460 = vmatmul.mubr.msk.bf16.vlgmr.msra.gmra.mrb[8].mxu1 %vm527_vm2, %v2531_v42 }
0x1af6   : > { %3470 = vmatpush3.bf16.xpose.msra.mxu1 %v2645_v44  ;;  %3471 = vmatprep.mubr.msk.bf16.mxu1 %vm3757_vm0, %v3756_v0 }
0x1af7   : > { %3481 = vmatprep.subr.bf16.mxu1 %v3756_v0 }
0x1afa   : > { %v2628_v47 = vpop.f32.mrb[84].mxu0 }
0x1afb   : > { %v3467_v48 = vpop.f32.mrb[85].mxu0  ;;  %v2629_v60 = vadd.f32 %v3099_v56, %v2628_v47 }
0x1afc   : > { %v2631_v49 = vpop.f32.mrb[86].mxu0 }
0x1afd   : > { %3472 = vmatmul.mubr.msk.bf16.vlgmr.msra.gmra.mrb[60].mxu1 %vm376_vm1, %v3947_v6  ;;  %v3468_v50 = vpop.f32.mrb[87].mxu0  ;;  %v2740_v61 = vpack.c.bf16 %v2629_v60, %v2629_v60 }
0x1afe   : > { %3483 = vmatprep.mubr.msk.bf16.mxu1 %vm3757_vm0, %v3756_v0 }
0x1b02   : > { %v2734_v12 = vpop.f32.mrb[88].mxu0 }
0x1b03   : > { %v3479_v6 = vpop.f32.mrb[89].mxu0 }
0x1b04   : > { %v2737_v13 = vpop.f32.mrb[90].mxu0 }
0x1b05   : > { %v3480_v14 = vpop.f32.mrb[91].mxu0 }
0x1bd0   : > { %v2681_v52 = vpop.f32.mrb[60].mxu1 }
0x1bd1   : > { %v2682_v53 = vadd.f32 %v3102_v51, %v2681_v52  ;;  %v3473_v54 = vpop.f32.mrb[61].mxu1 }
0x1bd2   : > { %v2684_v55 = vpop.f32.mrb[62].mxu1 }
0x1bd3   : > { %v2741_v57 = vpack.c.bf16 %v2682_v53, %v2682_v53  ;;  %v3474_v58 = vpop.f32.mrb[63].mxu1 }
0x1bd5   : > { %v2746_v59 = vsel %vm527_vm2, %v2741_v57, 0 }
0x1bd6   : > { %3482 = vmatpush3.bf16.xpose.msra.mxu1 %v2746_v59 }
0x1bd7   : > { %3493 = vmatprep.subr.bf16.mxu1 %v3756_v0 }
0x1bdd   : > { %3484 = vmatmul.mubr.msk.bf16.vlgmr.msra.gmra.mrb[64].mxu1 %vm527_vm2, %v2740_v61 }
0x1bde   : > { %3495 = vmatprep.mubr.msk.bf16.mxu1 %vm3757_vm0, %v3756_v0  ;;  %v3105_v0 = vld [vmem:[%s4393_s6 + $0x7] ss:$0 sm:$0xff]  ;;  %3494 = vmatpush3.bf16.msra.mxu1 %v2854_v19 }
0x1bdf   : > { %v2735_v15 = vadd.f32 %v3105_v0, %v2734_v12 }
0x1be1   : > { %v2800_v16 = vpack.c.bf16 %v2735_v15, %v2735_v15 }
0x1be3   : > { %v2805_v17 = vsel %vm591_vm4, %v2800_v16, 0 }
0x1be4   : > { %3488 = vmatpush3.bf16.msra.mxu0 %v2805_v17 }
0x1cb0   : > { %v2782_v1 = vpop.f32.mrb[64].mxu1 }
0x1cb1   : > { %v3485_v2 = vpop.f32.mrb[65].mxu1  ;;  %v2788_v3 = vsel %vm574_vm3, %v2782_v1, -inf }
0x1cb2   : > { %2789 = vmax.xlane.f32.xlu0 %v2788_v3  ;;  %v2785_v4 = vpop.f32.mrb[66].mxu1 }
0x1cb3   : > { %v3486_v5 = vpop.f32.mrb[67].mxu1 }
0x1d3f   : > { %v2790_v7 = vpop.xlane.xlu0 %2789 }
0x1d40   : > { %v2791_v8 = vsub.f32 %v2782_v1, %v2790_v7 }
0x1d42   : > { %v2792_v9 = vmul.f32 1.442695, %v2791_v8 }
0x1d44   : > { %3620 = vpow2.f32 %v2792_v9 }
0x1d4e   : > { %v3621_v10 = vpop.eup %3620 }
0x1d4f   : > { %v2794_v11 = vsel %vm574_vm3, %v3621_v10, 0.0 }
0x1d50   : > { %2795 = vadd.xlane.f32.xlu1 %v2794_v11 }
0x1ddd   : > { %v2796_v20 = vpop.xlane.xlu1 %2795 }
0x1dde   : > { %3622 = vrcp.f32 %v2796_v20 }
0x1de8   : > { %v3623_v21 = vpop.eup %3622 }
0x1de9   : > { %v2798_v22 = vmul.f32 %v3623_v21, %v3621_v10 }
0x1deb   : > { %v2799_v23 = vpack.c.bf16 %v2798_v22, %v2798_v22 }
0x1ded   : > { %3490 = vmatmul.mubr.msk.bf16.vlgmr.msra.gmra.mrb[92].mxu0 %vm574_vm3, %v2799_v23 }
0x1ec0   : > { %v2841_v24 = vpop.f32.mrb[92].mxu0 }
0x1ec1   : > { %v2847_v25 = vpack.c.bf16 %v2841_v24, %v2841_v24  ;;  %v3491_v26 = vpop.f32.mrb[93].mxu0 }
0x1ec2   : > { %v2844_v27 = vpop.f32.mrb[94].mxu0 }
0x1ec3   : > { %v3492_v28 = vpop.f32.mrb[95].mxu0  ;;  %3496 = vmatmul.mubr.msk.bf16.vlgmr.msra.gmra.mrb[8].mxu1 %vm527_vm2, %v2847_v25 }
0x1f96   : > { %v2890_v30 = vpop.f32.mrb[8].mxu1 }
0x1f97   : > { %v3499_v31 = vadd.f32 %v3003_v29, %v2890_v30  ;;  %v3497_v32 = vpop.f32.mrb[9].mxu1 }
0x1f98   : > { %v2893_v33 = vpop.f32.mrb[10].mxu1 }
0x1f99   : > { %v3498_v34 = vpop.f32.mrb[11].mxu1  ;;  %2897 = vst.msk [vmem:[%s353_s18] sm:$0xff] %vm376_vm1, %v3499_v31 }
0x1f9a   : > { %3693 = shalt.err (!%p3690_p11)
}
0x1f9b   : > { %s3694_s17 = scalar_lea.hbm %s4344_s27, 128  ;;  %s3698_s23 = scalar_lea.hbm %s4396_s9, 256 }
0x1f9c   : > { %p3695_p13 = scmp.ne.s32.totalorder %s4344_s27, %s3694_s17  ;;  %p3699_p6 = scmp.lt.u32.totalorder %s4344_s27, %s4396_s9 }
0x1f9d   : > { %p3700_p9 = scmp.lt.u32.totalorder %s3698_s23, %s3694_s17  ;;  %p3702_p12 = scmp.lt.u32.totalorder %s3694_s17, %s4344_s27 }
0x1f9e   : > { %p3696_p5 = pnand %p3695_p13, %p4415_p1 }
0x1f9f   : > { %p3701_p10 = por %p3700_p9, %p3699_p6 }
0x1fa0   : > { %p3697_p0 = pneg %p3696_p5 }
0x1fa1   : > { %p3703_p2 = por %p3702_p12, %p3701_p10 }
0x1fa3   : > { %p3704_p3 = pnand %p3703_p2, %p3697_p0 }
0x1fa5   : > { %3707 = shalt.err (!%p3704_p3)
}
0x1fa6   : > { %3536 = dma.vmem_to_hbm [thread:$0]  (%p4415_p1), %s4346_s21, 128, %s4344_s27, %s2899_s13  }
0x1fa7 PF: > { %p3553_p4 = scmp.ge.s32.totalorder %s3750_s12, 2  ;;  %s2924_s18 = sand.u32 1, %s3738_s30  }
0x1fa8   : > { %p4416_p7 = scmp.ne.s32.totalorder %s4407_s20, 0  ;;  %s2925_s24 = scalar_lea.sflag [#allocation4], %s2924_s18 }
0x1faa   : > { %p3546_p8 = pnand %p3553_p4, %p4416_p7 }
0x1fac   : > { %3733 = dma.done.wait (!%p3546_p8), %s2925_s24, 128  }
0x1fad   : > { %3735 = vsyncadd (!%p3546_p8), %s2925_s24, 4294967168  ;;  %s4417_s12 = sld [smem:[#allocation12_spill]]  ;;  %s4418_s26 = sld [smem:[#allocation11_spill]] }
0x1fae   : > { %s4419_s11 = sld [smem:[#allocation13_spill]]  ;;  %s4420_s30 = smov %s3742_s10 }
0x1fb3   : > { %p21_p11 = scmp.ge.s32.totalorder %s4417_s12, 4   ;;  %s4421_s10 = smov %s4418_s26 }
0x1fb5   :  { %23 = sbr.rel (!%p21_p11) target bundleno = 5 (0x5), region = 149 }
0x1fbc   :  { %2930 = vsyncpa [#allocation3], 1 }
0x1fbd   :  { %2932 = vsyncpa [#allocation3 + $0x1], 1 }
0x1fbe   :  { %2933 = vsyncpa [#allocation6], 1 }
0x1fbf   :  { %2934 = vsyncpa [#allocation4], 1 }
0x1fc0   :  { %2936 = vsyncpa [#allocation4 + $0x1], 1 }

</bundles_post_ra>
